<compile_context>
chip_gen: v5e
topology: v5e:2x2
jax: 0.10.0
libtpu: 0.0.40
codegen_flags: <defaults>
</compile_context>

<pallas_src>
import math

import jax
import jax.numpy as jnp
from jax.experimental import pallas as pl
from jax.experimental.pallas import tpu as pltpu

# ---- small synthetic config (stands in for 768-hidden, 12-layer DeBERTa-v3-base) ----
B = 2          # batch
S = 8          # sequence length
H = 32         # hidden size (stand-in for 768)
NH = 4         # attention heads
HD = H // NH   # head dim
F = 4 * H      # FFN intermediate size
L = 2          # encoder layers
C = 6          # classes  (self.fc = nn.Linear(768, 6))
C_PAD = 128    # lane-dense padded logits width
VOCAB = 64
LN_EPS = 1e-7  # DeBERTa-v3 layer_norm_eps


def _layernorm(x, g, b):
    mu = jnp.mean(x, axis=-1, keepdims=True)
    var = jnp.mean((x - mu) ** 2, axis=-1, keepdims=True)
    return (x - mu) * jax.lax.rsqrt(var + LN_EPS) * g + b


def _softmax(x):
    m = jnp.max(x, axis=-1, keepdims=True)
    e = jnp.exp(x - m)
    # divide -> EUP reciprocal (VALU slots stay free)
    return e * pl.reciprocal(jnp.sum(e, axis=-1, keepdims=True), approx=True)


def model_kernel(x_in_ref, maskbias_ref, emb_ln_ref,
                 w_attn_ref, wff1_ref, wff2_ref, lvecs_ref, bff1_ref,
                 wfc_ref, bfc_ref,
                 out_ref,
                 x_ref):
    """Grid = (example, layer). x_ref is the persistent [S, H] fp32 activation tile."""
    l = pl.program_id(1)
    n_layers = pl.num_programs(1)

    # ---- first layer step: embedding LayerNorm of the incoming tile into the scratch ----
    @pl.when(l == 0)
    def _():
        x0 = x_in_ref[...].astype(jnp.float32)                          # [S, H]
        x_ref[...] = _layernorm(x0, emb_ln_ref[0:1, :], emb_ln_ref[1:2, :])

    x = x_ref[...]                                                       # [S, H] fp32

    # ---- per-layer weights (streamed via the layer grid axis) ----
    wa = w_attn_ref[0]                                                   # [4, H, H] bf16: q,k,v,o
    vecs = lvecs_ref[0]                                                  # [9, H] fp32 packed rows
    bq, bk, bv, bo = vecs[0:1], vecs[1:2], vecs[2:3], vecs[3:4]
    ln1g, ln1b = vecs[4:5], vecs[5:6]
    bff2, ln2g, ln2b = vecs[6:7], vecs[7:8], vecs[8:9]

    # ---- multi-head self-attention (heads batched into one einsum pair) ----
    xb = x.astype(jnp.bfloat16)
    q = jnp.dot(xb, wa[0], preferred_element_type=jnp.float32) + bq      # [S, H]
    k = jnp.dot(xb, wa[1], preferred_element_type=jnp.float32) + bk
    v = jnp.dot(xb, wa[2], preferred_element_type=jnp.float32) + bv

    def split_heads(t):                                                  # [S, H] -> [NH, S, HD]
        return t.reshape(S, NH, HD).swapaxes(0, 1).astype(jnp.bfloat16)

    qh, kh, vh = split_heads(q), split_heads(k), split_heads(v)

    sc = jnp.einsum('hqd,hkd->hqk', qh, kh,
                    preferred_element_type=jnp.float32)                  # [NH, S, S]
    sc = sc * (1.0 / math.sqrt(HD)) + maskbias_ref[...]                  # + [1,1,S] key-mask bias
    p = _softmax(sc)
    ctx = jnp.einsum('hqk,hkd->hqd', p.astype(jnp.bfloat16), vh,
                     preferred_element_type=jnp.float32)                 # [NH, S, HD]
    ctx = ctx.swapaxes(0, 1).reshape(S, H)                               # [S, H]

    attn_out = jnp.dot(ctx.astype(jnp.bfloat16), wa[3],
                       preferred_element_type=jnp.float32) + bo
    x = _layernorm(x + attn_out, ln1g, ln1b)

    # ---- FFN ----
    ff = jnp.dot(x.astype(jnp.bfloat16), wff1_ref[0],
                 preferred_element_type=jnp.float32) + bff1_ref[0]       # [S, F]
    ff = jax.nn.gelu(ff, approximate=True)
    ff = jnp.dot(ff.astype(jnp.bfloat16), wff2_ref[0],
                 preferred_element_type=jnp.float32) + bff2
    x = _layernorm(x + ff, ln2g, ln2b)

    x_ref[...] = x

    # ---- last layer step: mean_output = last_hidden_state.mean(1); fc(mean_output) ----
    @pl.when(l == n_layers - 1)
    def _():
        pooled = jnp.mean(x, axis=0, keepdims=True)                      # [1, H] (unmasked mean)
        logits = jnp.dot(pooled.astype(jnp.bfloat16), wfc_ref[...],
                         preferred_element_type=jnp.float32) + bfc_ref[...]   # [1, C_PAD]
        out_ref[...] = logits.reshape(1, 1, C_PAD).astype(out_ref.dtype)


def init_params(key):
    keys = jax.random.split(key, 8)

    def nrm(k, shape, scale=0.02):
        return (scale * jax.random.normal(k, shape)).astype(jnp.float32)

    # Attention weights packed: [L, 4, H, H]  (0=Wq, 1=Wk, 2=Wv, 3=Wo), bf16 for the MXU.
    wq = nrm(keys[1], (L, H, H))
    wk = nrm(keys[2], (L, H, H))
    wv = nrm(keys[3], (L, H, H))
    wo = nrm(keys[4], (L, H, H))
    w_attn = jnp.stack([wq, wk, wv, wo], axis=1).astype(jnp.bfloat16)

    # Per-layer [1, H] vectors packed into one [L, 9, H] slab:
    # rows: bq, bk, bv, bo, ln1_g, ln1_b, bff2, ln2_g, ln2_b
    zeros_h = jnp.zeros((L, H), jnp.float32)
    ones_h = jnp.ones((L, H), jnp.float32)
    lvecs = jnp.stack([zeros_h, zeros_h, zeros_h, zeros_h,
                       ones_h, zeros_h, zeros_h, ones_h, zeros_h], axis=1)   # [L, 9, H]

    wfc = nrm(keys[5], (H, C))                                               # Linear(H, 6)
    wfc_pad = jnp.zeros((H, C_PAD), jnp.float32).at[:, :C].set(wfc).astype(jnp.bfloat16)
    bfc_pad = jnp.zeros((1, C_PAD), jnp.float32)

    return {
        'emb':     nrm(keys[0], (VOCAB, H)),
        'emb_ln':  jnp.concatenate([jnp.ones((1, H), jnp.float32),
                                    jnp.zeros((1, H), jnp.float32)], axis=0),  # [2, H]
        'w_attn':  w_attn,
        'wff1':    nrm(keys[6], (L, H, F)).astype(jnp.bfloat16),
        'bff1':    jnp.zeros((L, 1, F), jnp.float32),
        'wff2':    nrm(keys[7], (L, F, H)).astype(jnp.bfloat16),
        'lvecs':   lvecs,
        'wfc_pad': wfc_pad,
        'bfc_pad': bfc_pad,
    }


def webattack_forward(input_ids, attention_mask, params):
    """input_ids: [B, S] int32, attention_mask: [B, S] {0,1} -> logits [B, C]."""
    Bc, Sc = input_ids.shape
    # Glue (embedding gather + mask -> additive key bias); the hot path lives in the kernel.
    x = jnp.take(params['emb'], input_ids, axis=0).astype(jnp.float32)        # [B, S, H]
    x = x.reshape(Bc * Sc, H)                                                 # [B*S, H]
    maskbias = ((1.0 - attention_mask.astype(jnp.float32)) * -1e9).reshape(Bc, 1, Sc)

    # Advisory cost estimate (XLA scheduling hint).
    flops = Bc * L * (2 * Sc * H * H * 4 + 2 * NH * Sc * Sc * HD * 2 + 2 * Sc * H * F * 2) \
        + Bc * 2 * H * C_PAD
    transc = Bc * L * (NH * Sc * Sc + Sc * F)
    nbytes = int(x.nbytes) + int(maskbias.nbytes) + Bc * C_PAD * 4 \
        + sum(int(v.nbytes) for k, v in params.items() if k != 'emb')
    cost = pl.CostEstimate(flops=int(flops), transcendentals=int(transc),
                           bytes_accessed=int(nbytes))

    grid_spec = pltpu.PrefetchScalarGridSpec(
        num_scalar_prefetch=0,
        grid=(Bc, L),                       # (example tile, encoder layer)
        in_specs=[
            # per-example activation tile (resident across the layer axis)
            pl.BlockSpec((Sc, H), lambda b, l: (b, 0)),
            # per-example key-mask bias [1, 1, S]
            pl.BlockSpec((1, 1, Sc), lambda b, l: (b, 0, 0)),
            # embedding LayerNorm params (resident)
            pl.BlockSpec((2, H), lambda b, l: (0, 0)),
            # layer-streamed weights (pipeline double-buffers layer l+1 behind layer l compute)
            pl.BlockSpec((1, 4, H, H), lambda b, l: (l, 0, 0, 0)),
            pl.BlockSpec((1, H, F), lambda b, l: (l, 0, 0)),
            pl.BlockSpec((1, F, H), lambda b, l: (l, 0, 0)),
            pl.BlockSpec((1, 9, H), lambda b, l: (l, 0, 0)),
            pl.BlockSpec((1, 1, F), lambda b, l: (l, 0, 0)),
            # classifier (resident, lane-padded to 128 output lanes)
            pl.BlockSpec((H, C_PAD), lambda b, l: (0, 0)),
            pl.BlockSpec((1, C_PAD), lambda b, l: (0, 0)),
        ],
        out_specs=pl.BlockSpec((1, 1, C_PAD), lambda b, l: (b, 0, 0)),
        scratch_shapes=[pltpu.VMEM((Sc, H), jnp.float32)],   # persistent activation tile
    )

    out = pl.pallas_call(
        model_kernel,
        out_shape=jax.ShapeDtypeStruct((Bc, 1, C_PAD), jnp.float32),
        grid_spec=grid_spec,
        compiler_params=pltpu.CompilerParams(
            # example axis -> 2nd TensorCore on v7x; layer axis carries scratch/output state
            dimension_semantics=("parallel", "arbitrary"),
            vmem_limit_bytes=32 * 1024 * 1024),
        cost_estimate=cost,
    )(x, maskbias, params['emb_ln'],
      params['w_attn'], params['wff1'], params['wff2'],
      params['lvecs'], params['bff1'],
      params['wfc_pad'], params['bfc_pad'])
    return out.reshape(Bc, C_PAD)[:, :C]                                      # [B, C]


if __name__ == "__main__":
    key = jax.random.PRNGKey(0)
    kp, kid = jax.random.split(key, 2)
    params = init_params(kp)

    input_ids = jax.random.randint(kid, (B, S), 0, VOCAB, dtype=jnp.int32)
    lengths = jnp.array([S, S - 3], dtype=jnp.int32)
    attention_mask = (jnp.arange(S)[None, :] < lengths[:, None]).astype(jnp.int32)

    logits = webattack_forward(input_ids, attention_mask, params)
    jax.block_until_ready(logits)
    assert logits.shape == (B, C) and bool(jnp.all(jnp.isfinite(logits)))
    print("KERNEL_OK")
</pallas_src>

<mosaic_0001>
module attributes {stable_mosaic.version = 11 : i64} {
  func.func @model_kernel(%arg0: i32, %arg1: i32, %arg2: memref<8x32xf32, #tpu.memory_space<vmem>>, %arg3: memref<1x1x8xf32, #tpu.memory_space<vmem>>, %arg4: memref<2x32xf32, #tpu.memory_space<vmem>>, %arg5: memref<1x4x32x32xbf16, #tpu.memory_space<vmem>>, %arg6: memref<1x32x128xbf16, #tpu.memory_space<vmem>>, %arg7: memref<1x128x32xbf16, #tpu.memory_space<vmem>>, %arg8: memref<1x9x32xf32, #tpu.memory_space<vmem>>, %arg9: memref<1x1x128xf32, #tpu.memory_space<vmem>>, %arg10: memref<32x128xbf16, #tpu.memory_space<vmem>>, %arg11: memref<1x128xf32, #tpu.memory_space<vmem>>, %arg12: memref<1x1x128xf32, #tpu.memory_space<vmem>>, %arg13: memref<8x32xf32, #tpu.memory_space<vmem>>) attributes {dimension_semantics = [#tpu.dimension_semantics<parallel>, #tpu.dimension_semantics<arbitrary>], iteration_bounds = array<i64: 2, 2>, scalar_prefetch = 0 : i64, scratch_operands = 1 : i64, tpu.core_type = #tpu.core_type<tc>, window_params = [{transform_indices = @transform_0, window_bounds = array<i64: 8, 32>}, {transform_indices = @transform_1, window_bounds = array<i64: 1, 1, 8>}, {pipeline_mode = #tpu.pipeline_mode<synchronous>, transform_indices = @transform_2, window_bounds = array<i64: 2, 32>}, {transform_indices = @transform_3, window_bounds = array<i64: 1, 4, 32, 32>}, {transform_indices = @transform_4, window_bounds = array<i64: 1, 32, 128>}, {transform_indices = @transform_5, window_bounds = array<i64: 1, 128, 32>}, {transform_indices = @transform_6, window_bounds = array<i64: 1, 9, 32>}, {transform_indices = @transform_7, window_bounds = array<i64: 1, 1, 128>}, {pipeline_mode = #tpu.pipeline_mode<synchronous>, transform_indices = @transform_8, window_bounds = array<i64: 32, 128>}, {pipeline_mode = #tpu.pipeline_mode<synchronous>, transform_indices = @transform_9, window_bounds = array<i64: 1, 128>}, {transform_indices = @transform_10, window_bounds = array<i64: 1, 1, 128>}]} {
    %c0_i32 = arith.constant 0 : i32
    %0 = arith.cmpi eq, %arg1, %c0_i32 : i32
    %1 = arith.extui %0 : i1 to i32
    %c0_i32_0 = arith.constant 0 : i32
    %2 = arith.cmpi ne, %1, %c0_i32_0 : i32
    scf.if %2 {
      %c0_48 = arith.constant 0 : index
      %c0_49 = arith.constant 0 : index
      %145 = vector.load %arg2[%c0_48, %c0_49] : memref<8x32xf32, #tpu.memory_space<vmem>>, vector<8x32xf32>
      %c0_50 = arith.constant 0 : index
      %c0_51 = arith.constant 0 : index
      %146 = vector.load %arg4[%c0_50, %c0_51] : memref<2x32xf32, #tpu.memory_space<vmem>>, vector<1x32xf32>
      %c1 = arith.constant 1 : index
      %c0_52 = arith.constant 0 : index
      %147 = vector.load %arg4[%c1, %c0_52] : memref<2x32xf32, #tpu.memory_space<vmem>>, vector<1x32xf32>
      %cst_53 = arith.constant dense<0.000000e+00> : vector<8xf32>
      %148 = vector.multi_reduction <add>, %145, %cst_53 [1] : vector<8x32xf32> to vector<8xf32>
      %149 = vector.shape_cast %148 : vector<8xf32> to vector<8x1xf32>
      %cst_54 = arith.constant 3.200000e+01 : f32
      %150 = vector.broadcast %cst_54 : f32 to vector<8x1xf32>
      %151 = arith.divf %149, %150 : vector<8x1xf32>
      %152 = vector.broadcast %151 : vector<8x1xf32> to vector<8x32xf32>
      %153 = arith.subf %145, %152 : vector<8x32xf32>
      %154 = arith.mulf %153, %153 : vector<8x32xf32>
      %cst_55 = arith.constant dense<0.000000e+00> : vector<8xf32>
      %155 = vector.multi_reduction <add>, %154, %cst_55 [1] : vector<8x32xf32> to vector<8xf32>
      %156 = vector.shape_cast %155 : vector<8xf32> to vector<8x1xf32>
      %cst_56 = arith.constant 3.200000e+01 : f32
      %157 = vector.broadcast %cst_56 : f32 to vector<8x1xf32>
      %158 = arith.divf %156, %157 : vector<8x1xf32>
      %159 = vector.broadcast %151 : vector<8x1xf32> to vector<8x32xf32>
      %160 = arith.subf %145, %159 : vector<8x32xf32>
      %cst_57 = arith.constant 1.000000e-07 : f32
      %161 = vector.broadcast %cst_57 : f32 to vector<8x1xf32>
      %162 = arith.addf %158, %161 : vector<8x1xf32>
      %163 = math.rsqrt %162 : vector<8x1xf32>
      %164 = vector.broadcast %163 : vector<8x1xf32> to vector<8x32xf32>
      %165 = arith.mulf %160, %164 : vector<8x32xf32>
      %166 = vector.broadcast %146 : vector<1x32xf32> to vector<8x32xf32>
      %167 = arith.mulf %165, %166 : vector<8x32xf32>
      %168 = vector.broadcast %147 : vector<1x32xf32> to vector<8x32xf32>
      %169 = arith.addf %167, %168 : vector<8x32xf32>
      %c0_58 = arith.constant 0 : index
      %c0_59 = arith.constant 0 : index
      %170 = vector.load %arg13[%c0_58, %c0_59] : memref<8x32xf32, #tpu.memory_space<vmem>>, vector<8x32xf32>
      tpu.vector_store %arg13[%c0_58, %c0_59], %169 {strides = array<i32>} : memref<8x32xf32, #tpu.memory_space<vmem>>, vector<8x32xf32>,
    } else {
    }
    %c0 = arith.constant 0 : index
    %c0_1 = arith.constant 0 : index
    %3 = vector.load %arg13[%c0, %c0_1] : memref<8x32xf32, #tpu.memory_space<vmem>>, vector<8x32xf32>
    %c0_2 = arith.constant 0 : index
    %c0_3 = arith.constant 0 : index
    %c0_4 = arith.constant 0 : index
    %c0_5 = arith.constant 0 : index
    %4 = vector.load %arg5[%c0_2, %c0_3, %c0_4, %c0_5] : memref<1x4x32x32xbf16, #tpu.memory_space<vmem>>, vector<1x4x32x32xbf16>
    %5 = vector.shape_cast %4 : vector<1x4x32x32xbf16> to vector<4x32x32xbf16>
    %c0_6 = arith.constant 0 : index
    %c0_7 = arith.constant 0 : index
    %c0_8 = arith.constant 0 : index
    %6 = vector.load %arg8[%c0_6, %c0_7, %c0_8] : memref<1x9x32xf32, #tpu.memory_space<vmem>>, vector<1x9x32xf32>
    %7 = vector.shape_cast %6 : vector<1x9x32xf32> to vector<9x32xf32>
    %8 = vector.extract_strided_slice %7 {offsets = [0, 0], sizes = [1, 32], strides = [1, 1]} : vector<9x32xf32> to vector<1x32xf32>
    %9 = vector.extract_strided_slice %7 {offsets = [1, 0], sizes = [1, 32], strides = [1, 1]} : vector<9x32xf32> to vector<1x32xf32>
    %10 = vector.extract_strided_slice %7 {offsets = [2, 0], sizes = [1, 32], strides = [1, 1]} : vector<9x32xf32> to vector<1x32xf32>
    %11 = vector.extract_strided_slice %7 {offsets = [3, 0], sizes = [1, 32], strides = [1, 1]} : vector<9x32xf32> to vector<1x32xf32>
    %12 = vector.extract_strided_slice %7 {offsets = [4, 0], sizes = [1, 32], strides = [1, 1]} : vector<9x32xf32> to vector<1x32xf32>
    %13 = vector.extract_strided_slice %7 {offsets = [5, 0], sizes = [1, 32], strides = [1, 1]} : vector<9x32xf32> to vector<1x32xf32>
    %14 = vector.extract_strided_slice %7 {offsets = [6, 0], sizes = [1, 32], strides = [1, 1]} : vector<9x32xf32> to vector<1x32xf32>
    %15 = vector.extract_strided_slice %7 {offsets = [7, 0], sizes = [1, 32], strides = [1, 1]} : vector<9x32xf32> to vector<1x32xf32>
    %16 = vector.extract_strided_slice %7 {offsets = [8, 0], sizes = [1, 32], strides = [1, 1]} : vector<9x32xf32> to vector<1x32xf32>
    %17 = arith.truncf %3 : vector<8x32xf32> to vector<8x32xbf16>
    %18 = vector.extract_strided_slice %5 {offsets = [0, 0, 0], sizes = [1, 32, 32], strides = [1, 1, 1]} : vector<4x32x32xbf16> to vector<1x32x32xbf16>
    %19 = vector.shape_cast %18 : vector<1x32x32xbf16> to vector<32x32xbf16>
    %cst = arith.constant dense<0.000000e+00> : vector<8x32xf32>
    %20 = tpu.matmul %17, %19, %cst {dimension_numbers = #tpu.dot_dimension_numbers<[1], [0], [0], [1], [0, 0, 1, 1], [], []>} : vector<8x32xbf16>, vector<32x32xbf16>, vector<8x32xf32> -> vector<8x32xf32>
    %21 = vector.broadcast %8 : vector<1x32xf32> to vector<8x32xf32>
    %22 = arith.addf %20, %21 : vector<8x32xf32>
    %23 = vector.extract_strided_slice %5 {offsets = [1, 0, 0], sizes = [1, 32, 32], strides = [1, 1, 1]} : vector<4x32x32xbf16> to vector<1x32x32xbf16>
    %24 = vector.shape_cast %23 : vector<1x32x32xbf16> to vector<32x32xbf16>
    %cst_9 = arith.constant dense<0.000000e+00> : vector<8x32xf32>
    %25 = tpu.matmul %17, %24, %cst_9 {dimension_numbers = #tpu.dot_dimension_numbers<[1], [0], [0], [1], [0, 0, 1, 1], [], []>} : vector<8x32xbf16>, vector<32x32xbf16>, vector<8x32xf32> -> vector<8x32xf32>
    %26 = vector.broadcast %9 : vector<1x32xf32> to vector<8x32xf32>
    %27 = arith.addf %25, %26 : vector<8x32xf32>
    %28 = vector.extract_strided_slice %5 {offsets = [2, 0, 0], sizes = [1, 32, 32], strides = [1, 1, 1]} : vector<4x32x32xbf16> to vector<1x32x32xbf16>
    %29 = vector.shape_cast %28 : vector<1x32x32xbf16> to vector<32x32xbf16>
    %cst_10 = arith.constant dense<0.000000e+00> : vector<8x32xf32>
    %30 = tpu.matmul %17, %29, %cst_10 {dimension_numbers = #tpu.dot_dimension_numbers<[1], [0], [0], [1], [0, 0, 1, 1], [], []>} : vector<8x32xbf16>, vector<32x32xbf16>, vector<8x32xf32> -> vector<8x32xf32>
    %31 = vector.broadcast %10 : vector<1x32xf32> to vector<8x32xf32>
    %32 = arith.addf %30, %31 : vector<8x32xf32>
    %33 = vector.shape_cast %22 : vector<8x32xf32> to vector<8x4x8xf32>
    %34 = tpu.transpose %33, [1, 0, 2] : vector<8x4x8xf32> -> vector<4x8x8xf32>
    %35 = arith.truncf %34 : vector<4x8x8xf32> to vector<4x8x8xbf16>
    %36 = vector.shape_cast %27 : vector<8x32xf32> to vector<8x4x8xf32>
    %37 = tpu.transpose %36, [1, 0, 2] : vector<8x4x8xf32> -> vector<4x8x8xf32>
    %38 = arith.truncf %37 : vector<4x8x8xf32> to vector<4x8x8xbf16>
    %39 = vector.shape_cast %32 : vector<8x32xf32> to vector<8x4x8xf32>
    %40 = tpu.transpose %39, [1, 0, 2] : vector<8x4x8xf32> -> vector<4x8x8xf32>
    %41 = arith.truncf %40 : vector<4x8x8xf32> to vector<4x8x8xbf16>
    "tpu.trace_start"() <{level = 10 : i32, message = "hqd,hkd->hqk"}> : () -> ()
    %cst_11 = arith.constant dense<0.000000e+00> : vector<4x8x8xf32>
    %42 = tpu.matmul %35, %38, %cst_11 {dimension_numbers = #tpu.dot_dimension_numbers<[2], [2], [1], [1], [0, 0, 0, 1, 1, 1], [0], [0]>} : vector<4x8x8xbf16>, vector<4x8x8xbf16>, vector<4x8x8xf32> -> vector<4x8x8xf32>
    "tpu.trace_stop"() : () -> ()
    %cst_12 = arith.constant 0.353553385 : f32
    %43 = vector.broadcast %cst_12 : f32 to vector<4x8x8xf32>
    %44 = arith.mulf %42, %43 : vector<4x8x8xf32>
    %c0_13 = arith.constant 0 : index
    %c0_14 = arith.constant 0 : index
    %c0_15 = arith.constant 0 : index
    %45 = vector.load %arg3[%c0_13, %c0_14, %c0_15] : memref<1x1x8xf32, #tpu.memory_space<vmem>>, vector<1x1x8xf32>
    %46 = vector.broadcast %45 : vector<1x1x8xf32> to vector<4x8x8xf32>
    %47 = arith.addf %44, %46 : vector<4x8x8xf32>
    %cst_16 = arith.constant dense<0xFF800000> : vector<4x8xf32>
    %48 = vector.multi_reduction <maximumf>, %47, %cst_16 [2] : vector<4x8x8xf32> to vector<4x8xf32>
    %49 = vector.shape_cast %48 : vector<4x8xf32> to vector<4x8x1xf32>
    %50 = vector.broadcast %49 : vector<4x8x1xf32> to vector<4x8x8xf32>
    %51 = arith.subf %47, %50 : vector<4x8x8xf32>
    %52 = math.exp %51 : vector<4x8x8xf32>
    %cst_17 = arith.constant dense<0.000000e+00> : vector<4x8xf32>
    %53 = vector.multi_reduction <add>, %52, %cst_17 [2] : vector<4x8x8xf32> to vector<4x8xf32>
    %54 = vector.shape_cast %53 : vector<4x8xf32> to vector<4x8x1xf32>
    %55 = tpu.reciprocal %54 {approx = true} : vector<4x8x1xf32> -> vector<4x8x1xf32>
    %56 = vector.broadcast %55 : vector<4x8x1xf32> to vector<4x8x8xf32>
    %57 = arith.mulf %52, %56 : vector<4x8x8xf32>
    %58 = arith.truncf %57 : vector<4x8x8xf32> to vector<4x8x8xbf16>
    "tpu.trace_start"() <{level = 10 : i32, message = "hqk,hkd->hqd"}> : () -> ()
    %cst_18 = arith.constant dense<0.000000e+00> : vector<4x8x8xf32>
    %59 = tpu.matmul %58, %41, %cst_18 {dimension_numbers = #tpu.dot_dimension_numbers<[2], [1], [1], [2], [0, 0, 0, 1, 1, 2], [0], [0]>} : vector<4x8x8xbf16>, vector<4x8x8xbf16>, vector<4x8x8xf32> -> vector<4x8x8xf32>
    "tpu.trace_stop"() : () -> ()
    %60 = tpu.transpose %59, [1, 0, 2] : vector<4x8x8xf32> -> vector<8x4x8xf32>
    %61 = vector.shape_cast %60 : vector<8x4x8xf32> to vector<8x32xf32>
    %62 = arith.truncf %61 : vector<8x32xf32> to vector<8x32xbf16>
    %63 = vector.extract_strided_slice %5 {offsets = [3, 0, 0], sizes = [1, 32, 32], strides = [1, 1, 1]} : vector<4x32x32xbf16> to vector<1x32x32xbf16>
    %64 = vector.shape_cast %63 : vector<1x32x32xbf16> to vector<32x32xbf16>
    %cst_19 = arith.constant dense<0.000000e+00> : vector<8x32xf32>
    %65 = tpu.matmul %62, %64, %cst_19 {dimension_numbers = #tpu.dot_dimension_numbers<[1], [0], [0], [1], [0, 0, 1, 1], [], []>} : vector<8x32xbf16>, vector<32x32xbf16>, vector<8x32xf32> -> vector<8x32xf32>
    %66 = vector.broadcast %11 : vector<1x32xf32> to vector<8x32xf32>
    %67 = arith.addf %65, %66 : vector<8x32xf32>
    %68 = arith.addf %3, %67 : vector<8x32xf32>
    %cst_20 = arith.constant dense<0.000000e+00> : vector<8xf32>
    %69 = vector.multi_reduction <add>, %68, %cst_20 [1] : vector<8x32xf32> to vector<8xf32>
    %70 = vector.shape_cast %69 : vector<8xf32> to vector<8x1xf32>
    %cst_21 = arith.constant 3.200000e+01 : f32
    %71 = vector.broadcast %cst_21 : f32 to vector<8x1xf32>
    %72 = arith.divf %70, %71 : vector<8x1xf32>
    %73 = vector.broadcast %72 : vector<8x1xf32> to vector<8x32xf32>
    %74 = arith.subf %68, %73 : vector<8x32xf32>
    %75 = arith.mulf %74, %74 : vector<8x32xf32>
    %cst_22 = arith.constant dense<0.000000e+00> : vector<8xf32>
    %76 = vector.multi_reduction <add>, %75, %cst_22 [1] : vector<8x32xf32> to vector<8xf32>
    %77 = vector.shape_cast %76 : vector<8xf32> to vector<8x1xf32>
    %cst_23 = arith.constant 3.200000e+01 : f32
    %78 = vector.broadcast %cst_23 : f32 to vector<8x1xf32>
    %79 = arith.divf %77, %78 : vector<8x1xf32>
    %80 = vector.broadcast %72 : vector<8x1xf32> to vector<8x32xf32>
    %81 = arith.subf %68, %80 : vector<8x32xf32>
    %cst_24 = arith.constant 1.000000e-07 : f32
    %82 = vector.broadcast %cst_24 : f32 to vector<8x1xf32>
    %83 = arith.addf %79, %82 : vector<8x1xf32>
    %84 = math.rsqrt %83 : vector<8x1xf32>
    %85 = vector.broadcast %84 : vector<8x1xf32> to vector<8x32xf32>
    %86 = arith.mulf %81, %85 : vector<8x32xf32>
    %87 = vector.broadcast %12 : vector<1x32xf32> to vector<8x32xf32>
    %88 = arith.mulf %86, %87 : vector<8x32xf32>
    %89 = vector.broadcast %13 : vector<1x32xf32> to vector<8x32xf32>
    %90 = arith.addf %88, %89 : vector<8x32xf32>
    %91 = arith.truncf %90 : vector<8x32xf32> to vector<8x32xbf16>
    %c0_25 = arith.constant 0 : index
    %c0_26 = arith.constant 0 : index
    %c0_27 = arith.constant 0 : index
    %92 = vector.load %arg6[%c0_25, %c0_26, %c0_27] : memref<1x32x128xbf16, #tpu.memory_space<vmem>>, vector<1x32x128xbf16>
    %93 = vector.shape_cast %92 : vector<1x32x128xbf16> to vector<32x128xbf16>
    %cst_28 = arith.constant dense<0.000000e+00> : vector<8x128xf32>
    %94 = tpu.matmul %91, %93, %cst_28 {dimension_numbers = #tpu.dot_dimension_numbers<[1], [0], [0], [1], [0, 0, 1, 1], [], []>} : vector<8x32xbf16>, vector<32x128xbf16>, vector<8x128xf32> -> vector<8x128xf32>
    %c0_29 = arith.constant 0 : index
    %c0_30 = arith.constant 0 : index
    %c0_31 = arith.constant 0 : index
    %95 = vector.load %arg9[%c0_29, %c0_30, %c0_31] : memref<1x1x128xf32, #tpu.memory_space<vmem>>, vector<1x1x128xf32>
    %96 = vector.shape_cast %95 : vector<1x1x128xf32> to vector<1x128xf32>
    %97 = vector.broadcast %96 : vector<1x128xf32> to vector<8x128xf32>
    %98 = arith.addf %94, %97 : vector<8x128xf32>
    %99 = arith.mulf %98, %98 : vector<8x128xf32>
    %100 = arith.mulf %98, %99 : vector<8x128xf32>
    %cst_32 = arith.constant 4.471500e-02 : f32
    %101 = vector.broadcast %cst_32 : f32 to vector<8x128xf32>
    %102 = arith.mulf %101, %100 : vector<8x128xf32>
    %103 = arith.addf %98, %102 : vector<8x128xf32>
    %cst_33 = arith.constant 0.797884583 : f32
    %104 = vector.broadcast %cst_33 : f32 to vector<8x128xf32>
    %105 = arith.mulf %104, %103 : vector<8x128xf32>
    %106 = math.tanh %105 : vector<8x128xf32>
    %cst_34 = arith.constant 1.000000e+00 : f32
    %107 = vector.broadcast %cst_34 : f32 to vector<8x128xf32>
    %108 = arith.addf %107, %106 : vector<8x128xf32>
    %cst_35 = arith.constant 5.000000e-01 : f32
    %109 = vector.broadcast %cst_35 : f32 to vector<8x128xf32>
    %110 = arith.mulf %109, %108 : vector<8x128xf32>
    %111 = arith.mulf %98, %110 : vector<8x128xf32>
    %112 = arith.truncf %111 : vector<8x128xf32> to vector<8x128xbf16>
    %c0_36 = arith.constant 0 : index
    %c0_37 = arith.constant 0 : index
    %c0_38 = arith.constant 0 : index
    %113 = vector.load %arg7[%c0_36, %c0_37, %c0_38] : memref<1x128x32xbf16, #tpu.memory_space<vmem>>, vector<1x128x32xbf16>
    %114 = vector.shape_cast %113 : vector<1x128x32xbf16> to vector<128x32xbf16>
    %cst_39 = arith.constant dense<0.000000e+00> : vector<8x32xf32>
    %115 = tpu.matmul %112, %114, %cst_39 {dimension_numbers = #tpu.dot_dimension_numbers<[1], [0], [0], [1], [0, 0, 1, 1], [], []>} : vector<8x128xbf16>, vector<128x32xbf16>, vector<8x32xf32> -> vector<8x32xf32>
    %116 = vector.broadcast %14 : vector<1x32xf32> to vector<8x32xf32>
    %117 = arith.addf %115, %116 : vector<8x32xf32>
    %118 = arith.addf %90, %117 : vector<8x32xf32>
    %cst_40 = arith.constant dense<0.000000e+00> : vector<8xf32>
    %119 = vector.multi_reduction <add>, %118, %cst_40 [1] : vector<8x32xf32> to vector<8xf32>
    %120 = vector.shape_cast %119 : vector<8xf32> to vector<8x1xf32>
    %cst_41 = arith.constant 3.200000e+01 : f32
    %121 = vector.broadcast %cst_41 : f32 to vector<8x1xf32>
    %122 = arith.divf %120, %121 : vector<8x1xf32>
    %123 = vector.broadcast %122 : vector<8x1xf32> to vector<8x32xf32>
    %124 = arith.subf %118, %123 : vector<8x32xf32>
    %125 = arith.mulf %124, %124 : vector<8x32xf32>
    %cst_42 = arith.constant dense<0.000000e+00> : vector<8xf32>
    %126 = vector.multi_reduction <add>, %125, %cst_42 [1] : vector<8x32xf32> to vector<8xf32>
    %127 = vector.shape_cast %126 : vector<8xf32> to vector<8x1xf32>
    %cst_43 = arith.constant 3.200000e+01 : f32
    %128 = vector.broadcast %cst_43 : f32 to vector<8x1xf32>
    %129 = arith.divf %127, %128 : vector<8x1xf32>
    %130 = vector.broadcast %122 : vector<8x1xf32> to vector<8x32xf32>
    %131 = arith.subf %118, %130 : vector<8x32xf32>
    %cst_44 = arith.constant 1.000000e-07 : f32
    %132 = vector.broadcast %cst_44 : f32 to vector<8x1xf32>
    %133 = arith.addf %129, %132 : vector<8x1xf32>
    %134 = math.rsqrt %133 : vector<8x1xf32>
    %135 = vector.broadcast %134 : vector<8x1xf32> to vector<8x32xf32>
    %136 = arith.mulf %131, %135 : vector<8x32xf32>
    %137 = vector.broadcast %15 : vector<1x32xf32> to vector<8x32xf32>
    %138 = arith.mulf %136, %137 : vector<8x32xf32>
    %139 = vector.broadcast %16 : vector<1x32xf32> to vector<8x32xf32>
    %140 = arith.addf %138, %139 : vector<8x32xf32>
    %c0_45 = arith.constant 0 : index
    %c0_46 = arith.constant 0 : index
    %141 = vector.load %arg13[%c0_45, %c0_46] : memref<8x32xf32, #tpu.memory_space<vmem>>, vector<8x32xf32>
    tpu.vector_store %arg13[%c0_45, %c0_46], %140 {strides = array<i32>} : memref<8x32xf32, #tpu.memory_space<vmem>>, vector<8x32xf32>,
    %c1_i32 = arith.constant 1 : i32
    %142 = arith.cmpi eq, %arg1, %c1_i32 : i32
    %143 = arith.extui %142 : i1 to i32
    %c0_i32_47 = arith.constant 0 : i32
    %144 = arith.cmpi ne, %143, %c0_i32_47 : i32
    scf.if %144 {
      %cst_48 = arith.constant dense<0.000000e+00> : vector<32xf32>
      %145 = vector.multi_reduction <add>, %140, %cst_48 [0] : vector<8x32xf32> to vector<32xf32>
      %146 = vector.shape_cast %145 : vector<32xf32> to vector<1x32xf32>
      %cst_49 = arith.constant 8.000000e+00 : f32
      %147 = vector.broadcast %cst_49 : f32 to vector<1x32xf32>
      %148 = arith.divf %146, %147 : vector<1x32xf32>
      %149 = arith.truncf %148 : vector<1x32xf32> to vector<1x32xbf16>
      %c0_50 = arith.constant 0 : index
      %c0_51 = arith.constant 0 : index
      %150 = vector.load %arg10[%c0_50, %c0_51] : memref<32x128xbf16, #tpu.memory_space<vmem>>, vector<32x128xbf16>
      %cst_52 = arith.constant dense<0.000000e+00> : vector<1x128xf32>
      %151 = tpu.matmul %149, %150, %cst_52 {dimension_numbers = #tpu.dot_dimension_numbers<[1], [0], [0], [1], [0, 0, 1, 1], [], []>} : vector<1x32xbf16>, vector<32x128xbf16>, vector<1x128xf32> -> vector<1x128xf32>
      %c0_53 = arith.constant 0 : index
      %c0_54 = arith.constant 0 : index
      %152 = vector.load %arg11[%c0_53, %c0_54] : memref<1x128xf32, #tpu.memory_space<vmem>>, vector<1x128xf32>
      %153 = arith.addf %151, %152 : vector<1x128xf32>
      %154 = vector.shape_cast %153 : vector<1x128xf32> to vector<1x1x128xf32>
      %c0_55 = arith.constant 0 : index
      %c0_56 = arith.constant 0 : index
      %c0_57 = arith.constant 0 : index
      %155 = vector.load %arg12[%c0_55, %c0_56, %c0_57] : memref<1x1x128xf32, #tpu.memory_space<vmem>>, vector<1x1x128xf32>
      tpu.vector_store %arg12[%c0_55, %c0_56, %c0_57], %154 {strides = array<i32>} : memref<1x1x128xf32, #tpu.memory_space<vmem>>, vector<1x1x128xf32>,
    } else {
    }
    return
  }
  func.func @transform_0(%arg0: i32, %arg1: i32) -> (i32, i32) {
    %c0_i32 = arith.constant 0 : i32
    %c0_i32_0 = arith.constant 0 : i32
    return %arg0, %c0_i32 : i32, i32
  }
  func.func @transform_1(%arg0: i32, %arg1: i32) -> (i32, i32, i32) {
    %c0_i32 = arith.constant 0 : i32
    %c0_i32_0 = arith.constant 0 : i32
    %c0_i32_1 = arith.constant 0 : i32
    return %arg0, %c0_i32, %c0_i32_0 : i32, i32, i32
  }
  func.func @transform_2(%arg0: i32, %arg1: i32) -> (i32, i32) {
    %c0_i32 = arith.constant 0 : i32
    %c0_i32_0 = arith.constant 0 : i32
    %c0_i32_1 = arith.constant 0 : i32
    return %c0_i32, %c0_i32_0 : i32, i32
  }
  func.func @transform_3(%arg0: i32, %arg1: i32) -> (i32, i32, i32, i32) {
    %c0_i32 = arith.constant 0 : i32
    %c0_i32_0 = arith.constant 0 : i32
    %c0_i32_1 = arith.constant 0 : i32
    %c0_i32_2 = arith.constant 0 : i32
    return %arg1, %c0_i32, %c0_i32_0, %c0_i32_1 : i32, i32, i32, i32
  }
  func.func @transform_4(%arg0: i32, %arg1: i32) -> (i32, i32, i32) {
    %c0_i32 = arith.constant 0 : i32
    %c0_i32_0 = arith.constant 0 : i32
    %c0_i32_1 = arith.constant 0 : i32
    return %arg1, %c0_i32, %c0_i32_0 : i32, i32, i32
  }
  func.func @transform_5(%arg0: i32, %arg1: i32) -> (i32, i32, i32) {
    %c0_i32 = arith.constant 0 : i32
    %c0_i32_0 = arith.constant 0 : i32
    %c0_i32_1 = arith.constant 0 : i32
    return %arg1, %c0_i32, %c0_i32_0 : i32, i32, i32
  }
  func.func @transform_6(%arg0: i32, %arg1: i32) -> (i32, i32, i32) {
    %c0_i32 = arith.constant 0 : i32
    %c0_i32_0 = arith.constant 0 : i32
    %c0_i32_1 = arith.constant 0 : i32
    return %arg1, %c0_i32, %c0_i32_0 : i32, i32, i32
  }
  func.func @transform_7(%arg0: i32, %arg1: i32) -> (i32, i32, i32) {
    %c0_i32 = arith.constant 0 : i32
    %c0_i32_0 = arith.constant 0 : i32
    %c0_i32_1 = arith.constant 0 : i32
    return %arg1, %c0_i32, %c0_i32_0 : i32, i32, i32
  }
  func.func @transform_8(%arg0: i32, %arg1: i32) -> (i32, i32) {
    %c0_i32 = arith.constant 0 : i32
    %c0_i32_0 = arith.constant 0 : i32
    %c0_i32_1 = arith.constant 0 : i32
    return %c0_i32, %c0_i32_0 : i32, i32
  }
  func.func @transform_9(%arg0: i32, %arg1: i32) -> (i32, i32) {
    %c0_i32 = arith.constant 0 : i32
    %c0_i32_0 = arith.constant 0 : i32
    %c0_i32_1 = arith.constant 0 : i32
    return %c0_i32, %c0_i32_0 : i32, i32
  }
  func.func @transform_10(%arg0: i32, %arg1: i32) -> (i32, i32, i32) {
    %c0_i32 = arith.constant 0 : i32
    %c0_i32_0 = arith.constant 0 : i32
    %c0_i32_1 = arith.constant 0 : i32
    return %arg0, %c0_i32, %c0_i32_0 : i32, i32, i32
  }
}

</mosaic_0001>

<bundles_post_ra>
// kernel: tpu_custom_call.1
= control target key start
LH: loop header
LB: loop body
LE: loop exit
PB: predicated region body
PF: predicated region fallthrough
CT: control target
= control target key end

     0   :  { %s2709_s0 = inlined_call_operand.vmem [shape: f32[16,32], index: 0, kind: input, shape index: {}]   ;;  %s2710_s1 = inlined_call_operand.vmem [shape: f32[2,1,8], index: 1, kind: input, shape index: {}]   ;;  %s2711_s2 = inlined_call_operand.vmem [shape: f32[2,32], index: 2, kind: input, shape index: {}]   ;;  %s2712_s3 = inlined_call_operand.vmem [shape: bf16[2,4,32,32], index: 3, kind: input, shape index: {}]   ;;  %s2713_s4 = inlined_call_operand.vmem [shape: bf16[2,32,128], index: 4, kind: input, shape index: {}]   ;;  %s2714_s5 = inlined_call_operand.vmem [shape: bf16[2,128,32], index: 5, kind: input, shape index: {}]   ;;  %s2715_s6 = inlined_call_operand.vmem [shape: f32[2,9,32], index: 6, kind: input, shape index: {}]   ;;  %s2716_s7 = inlined_call_operand.vmem [shape: f32[2,1,128], index: 7, kind: input, shape index: {}]   ;;  %s2717_s8 = inlined_call_operand.hbm [shape: bf16[32,128], index: 8, kind: input, shape index: {}]   ;;  %s2718_s9 = inlined_call_operand.vmem [shape: f32[1,128], index: 9, kind: input, shape index: {}]   ;;  %s2719_s10 = inlined_call_operand.hbm [shape: f32[2,1,128], index: 10, kind: output, shape index: {}]  }
   0x1   :  { %2731 = sst [smem:[#allocation19_spill]] %s2709_s0 }
   0x2   :  { %2732 = sst [smem:[#allocation20_spill]] %s2717_s8 }
   0x3   :  { %2733 = sst [smem:[#allocation21_spill]] %s2719_s10 }
   0x4   :  { %15 = vsyncpa [#allocation4], 0 }
   0x5   :  { %16 = vsyncpa [#allocation5], 0 }
   0x6   :  { %18 = vsyncpa [#allocation5 + $0x1], 0  ;;  %s2246_s13 = smov 0   ;;  %s2248_s14 = smov 0  }
   0x7   :  { %s2250_s15 = smov 0   ;;  %s2252_s16 = smov 0  }
   0x8   :  { %s2254_s17 = smov 0   ;;  %s2256_s18 = smov 0  }
   0x9   :  { %s2258_s19 = smov 0   ;;  %s2260_s20 = smov 0  }
   0xa LB: > { %2734 = sst [smem:[#allocation9_spill]] %s2147_s13  ;;  %s1778_s21 = sadd.s32 4294967295, %s2175_s20   ;;  %s2175_s20 = sphi %s2260_s20, %s24_s20   ;;  %s2171_s19 = sphi %s2258_s19, %s2762_s19   ;;  %s2167_s18 = sphi %s2256_s18, %s2761_s18   ;;  %s2163_s17 = sphi %s2254_s17, %s2760_s17   ;;  %s2159_s16 = sphi %s2252_s16, %s2759_s16   ;;  %s2155_s15 = sphi %s2250_s15, %s2758_s15   ;;  %s2151_s14 = sphi %s2248_s14, %s2764_s14   ;;  %s2147_s13 = sphi %s2246_s13, %s2763_s13  }
   0xb   : > { %2735 = sst [smem:[#allocation10_spill]] %s2155_s15  ;;  %s1779_s22 = sadd.s32 4294967294, %s2175_s20  }
   0xc   : > { %2736 = sst [smem:[#allocation11_spill]] %s2167_s18  ;;  %s33_s23 = sadd.s32 1, %s2167_s18 }
   0xd   : > { %2737 = sst [smem:[#allocation12_spill]] %s2171_s19  ;;  %s36_s24 = sadd.s32 1, %s2171_s19 }
   0xe   : > { %2738 = sst [smem:[#allocation13_spill]] %s2175_s20  ;;  %p34_p0 = scmp.ge.s32.totalorder %s33_s23, 2 }
   0xf   : > { %s288_s25 = sadd.s32 1, %s2155_s15  ;;  %p298_p1 = scmp.ne.s32.totalorder %s2155_s15, %s2151_s14 }
  0x10   : > { %p299_p2 = scmp.eq.s32.totalorder %s1778_s21, 3  ;;  %s2766_s23 = smov (%p34_p0, %s33_s23), 0 }
  0x11   : > { %2739 = sst [smem:[#allocation14_spill]] %s2766_s23  ;;  %s2768_s24 = smov (!%p34_p0, %s36_s24), %s2171_s19 }
  0x12   : > { %p2296_p3 = por %p299_p2, %p298_p1  ;;  %p304_p4 = scmp.ne.s32.totalorder %s2151_s14, %s2147_s13 }
  0x13   : > { %p38_p5 = scmp.ge.s32.totalorder %s2768_s24, 2  ;;  %p305_p6 = scmp.eq.s32.totalorder %s1779_s22, 3 }
  0x14   : > { %s2740_s26 = scalar_select %p2296_p3, 1, 0 }
  0x15   : > { %p1780_p7 = scmp.ge.s32.totalorder %s2175_s20, 1  ;;  %p312_p8 = scmp.lt.s32.totalorder %s2175_s20, 5 }
  0x16   : > { %2741 = sst [smem:[#allocation15_spill]] %s2740_s26  ;;  %s2770_s24 = smov (%p38_p5, %s2768_s24), 0 }
  0x17   : > { %2742 = sst [smem:[#allocation16_spill]] %s2770_s24  ;;  %p2306_p9 = por %p305_p6, %p304_p4 }
  0x18   : > { %p2310_p10 = pnand %p1780_p7, %p312_p8  ;;  %s285_s29 = ssub.s32 %s2171_s19, %s2770_s24 }
  0x19   : > { %s2743_s27 = scalar_select %p2306_p9, 1, 0 }
  0x1a   : > { %p286_p11 = scmp.eq.s32.totalorder %s285_s29, 0  ;;  %p1922_p12 = pneg %p2310_p10 }
  0x1b   : > { %2744 = sst [smem:[#allocation17_spill]] %s2743_s27  ;;  %p1930_p13 = scmp.eq.s32.totalorder %s1778_s21, 0 }
  0x1c   : > { %s2746_s8 = sld [smem:[#allocation20_spill]]  ;;  %s2177_s23 = smov [#allocation3]  }
  0x1d   : > { %s2322_s22 = scalar_select %p286_p11, %s2155_s15, %s288_s25  }
  0x1e   : > { %s328_s18 = sshll.u32 %s2177_s23, 4  ;;  %p1923_p0 = pnand %p1930_p13, %p1922_p12  ;;  %s329_s18 = int_to_ptr.vmem [resolvable:$true] %s328_s18 }
  0x1f   : > { %2747 = sst [smem:[#allocation18_spill]] %s2322_s22  ;;  %s2178_s27 = smov 64  }
  0x20   : > { %s2179_s13 = smov 4   ;;  %398 = sbr.rel (%p2310_p10) target bundleno = 2427 (0x97b), region = 60 }
  0x22   : > { %s326_s12 = sshll.u32 %s2746_s8, 4  ;;  %s327_s12 = int_to_ptr.hbm [resolvable:$true] %s326_s12 }
  0x23   : > { %1925 = dma.hbm_to_vmem [thread:$0]  (!%p1923_p0), %s327_s12, 256, %s329_s18, [#allocation4], %s2178_s27, %s2178_s27, %s2179_s13  }
  0x25   : > { %2138 = dma.done.wait (%p1930_p13), [#allocation4], 256  }
  0x26   : > { %2140 = vsyncadd (%p1930_p13), [#allocation4], 4294967040  ;;  %p461_p1 = scmp.lt.s32.totalorder %s2163_s17, 1  ;;  %p468_p2 = scmp.lt.s32.totalorder %s2159_s16, 1 }
  0x27   : > { %s2748_s0 = sld [smem:[#allocation19_spill]]  ;;  %s2749_s28 = sand.u32 1, %s2151_s14  }
  0x28   : > { %s2330_s23 = scalar_select %p461_p1, %s2163_s17, 1 }
  0x29   : > { %s2333_s25 = scalar_select %p468_p2, %s2159_s16, 1 }
  0x2a   : > { %s1785_s13 = sshll.u32 %s2330_s23, 3  ;;  %p1794_p4 = scmp.ne.s32.totalorder %s2159_s16, 0 }
  0x2b   : > { %s1892_s12 = sshll.u32 %s2333_s25, 6  ;;  %s1893_s19 = sshll.u32 %s2333_s25, 4 }
  0x2c   : > { %s2347_s24 = scalar_lea.vmem %s2712_s3, %s1892_s12  ;;  %s2353_s20 = scalar_lea.vmem %s2713_s4, %s1893_s19 }
  0x2d   : > { %s464_s11 = scalar_lea.vmem %s2748_s0, %s1785_s13  ;;  %s2358_s18 = scalar_lea.vmem %s2714_s5, %s1892_s12 }
  0x2e   : > { %s2363_s13 = scalar_lea.vmem %s2715_s6, %s1893_s19  ;;  %s490_s21 = scalar_lea.vmem %s2716_s7, %s2333_s25 }
  0x2f   : > { %s2371_s0 = scalar_lea.vmem [#allocation6], %s2749_s28  ;;  %495 = sbr.rel (%p1794_p4) target bundleno = 322 (0x142), region = 68 }
  0x34   : > { %v496_v0 = vld [vmem:[%s464_s11] sm:$0xff]  ;;  %vm499_vm0 = vcmask 261120   ;;  %v2180_v2 = vmov 32.0  }
  0x35   : > { %v500_v1 = vsel %vm499_vm0, %v496_v0, 0.0  ;;  %2013 = vrcp.f32 %v2180_v2  ;;  %v2011_v23 = vld [vmem:[%s2711_s2] ss:$0 sm:$0xff]  ;;  %v2012_v25 = vld [vmem:[%s2711_s2 + $0x1] ss:$0 sm:$0xff] }
  0x36   : > { %501 = vadd.xlane.f32.xlu0 %v500_v1 }
  0x3b   : > { %v2014_v3 = vpop.eup %2013 }
  0x3c   : > { %v504_v4 = vmul.f32 32.0, %v2014_v3  ;;  %vm508_vm1 = vweird.f32 %v2014_v3 }
  0x3e   : > { %v505_v5 = vsub.f32 1.0, %v504_v4 }
  0x40   : > { %v506_v6 = vmul.f32 %v2014_v3, %v505_v5 }
  0x42   : > { %v507_v7 = vadd.f32 %v2014_v3, %v506_v6 }
  0x44   : > { %v509_v8 = vsel %vm508_vm1, %v2014_v3, %v507_v7 }
  0xa9   : > { %v502_v9 = vpop.xlane.xlu0 %501 }
  0xaa   : > { %v510_v10 = vmul.f32 %v509_v8, %v502_v9 }
  0xac   : > { %v511_v11 = vsub.f32 %v496_v0, %v510_v10 }
  0xae   : > { %v512_v12 = vmul.f32 %v511_v11, %v511_v11 }
  0xb0   : > { %v513_v13 = vsel %vm499_vm0, %v512_v12, 0.0 }
  0xb1   : > { %514 = vadd.xlane.f32.xlu0 %v513_v13 }
 0x124   : > { %v515_v14 = vpop.xlane.xlu0 %514 }
 0x125   : > { %v516_v15 = vmul.f32 %v515_v14, %v509_v8 }
 0x127   : > { %v517_v16 = vadd.f32 1e-07, %v516_v15 }
 0x129   : > { %2015 = vrsqrt.f32 %v517_v16  ;;  %vm524_vm3 = vweird.f32 %v517_v16 }
 0x12f   : > { %v2016_v17 = vpop.eup %2015 }
 0x130   : > { %v519_v18 = vmul.f32 %v2016_v17, %v517_v16  ;;  %vm525_vm2 = vweird.f32 %v2016_v17 }
 0x131   : > { %vm526_vm4 = vmor %vm524_vm3, %vm525_vm2 }
 0x132   : > { %v520_v19 = vmul.f32 %v2016_v17, %v519_v18 }
 0x134   : > { %v521_v20 = vmul.f32 0.5, %v520_v19 }
 0x136   : > { %v522_v21 = vsub.f32 1.5, %v521_v20 }
 0x138   : > { %v523_v22 = vmul.f32 %v2016_v17, %v522_v21 }
 0x13a   : > { %v527_v24 = vsel %vm526_vm4, %v2016_v17, %v523_v22 }
 0x13b   : > { %v528_v26 = vmul.f32 %v527_v24, %v511_v11 }
 0x13d   : > { %v530_v27 = vmul.f32 %v2011_v23, %v528_v26 }
 0x13f   : > { %v532_v28 = vadd.f32 %v2012_v25, %v530_v27 }
 0x141   : > { %533 = vst.msk [vmem:[#allocation2] sm:$0xff] %vm499_vm0, %v532_v28 }
 0x142 PF: > { %v1897_v29 = vld [vmem:[%s2347_s24 + $0x8] sm:$0xff]  ;;  %v1899_v30 = vld [vmem:[%s2347_s24 + $0x18] sm:$0xff]  ;;  %v1896_v31 = vld [vmem:[%s2347_s24] sm:$0xff]  ;;  %vm567_vm5 = vcmask 261120   ;;  %s2181_s22 = smov 112   ;;  %s2182_s28 = smov 104  }
 0x143   : > { %v1898_v32 = vld [vmem:[%s2347_s24 + $0x10] sm:$0xff]  ;;  %577 = vmatpush.bf16.msra.mxu0 %v1897_v29  ;;  %603 = vmatpush.bf16.msra.mxu2 %v1899_v30  ;;  %v2394_v35 = vld [vmem:[%s2363_s13] sm:$0xff]  ;;  %s2183_s11 = smov 120   ;;  %v1901_v44 = vld [vmem:[%s2347_s24 + $0x28] sm:$0xff]  ;;  %v2184_v47 = vmov 1983009808   ;;  %s2750_s29 = scalar_lea.vmem %s2710_s1, %s2330_s23 }
 0x144   : > { %v554_v36 = vperm.slane %v2394_v35, 0  ;;  %v584_v39 = vperm.slane %v2394_v35, 1  ;;  %v1900_v45 = vld [vmem:[%s2347_s24 + $0x20] sm:$0xff]  ;;  %v652_v48 = vunpack.c.l.s4 %v2184_v47  ;;  %vm647_vm6 = vcmask 1047556   ;;  %s2186_s23 = smov 24   ;;  %s2187_s30 = smov 16  }
 0x145   : > { %v2185_v60 = vmov 1934713408   ;;  %vm1009_vm7 = vcmask 64512   ;;  %vm1149_vm8 = vcmask 1043456   ;;  %s2188_s8 = smov 8   ;;  %vm1346_vm9 = vcmask 130048  }
 0x146   : > { %v2408_v56 = vunpack.c.0.s8 %v652_v48  ;;  %v676_v61 = vunpack.c.l.s4 %v2185_v60  ;;  %vm1348_vm10 = vcmask 195584   ;;  %p1880_p5 = scmp.ne.s32.totalorder %s2159_s16, 1 }
 0x147   : > { %578 = vmatpush.bf16.msra.mxu0 %v1896_v31  ;;  %604 = vmatpush.bf16.msra.mxu2 %v1898_v32 }
 0x148   : > { %v2387_v33 = vld [vmem:[#allocation2] sm:$0xff]  ;;  %v2417_v5 = vunpack.c.0.s8 %v676_v61 }
 0x149   : > { %v553_v34 = vpack.c.bf16 %v2387_v33, %v2387_v33 }
 0x14b   : > { %1803 = vmatmul.msk.bf16.vlgmr.msra.gmra.mxu0 %vm567_vm5, %v553_v34  ;;  %1812 = vmatmul.msk.bf16.vlgmr.msra.gmra.mxu2 %vm567_vm5, %v553_v34 }
 0x14c   : > { %629 = vmatpush.bf16.msrb.mxu2 %v1901_v44 }
 0x150   : > { %630 = vmatpush.bf16.msrb.mxu2 %v1900_v45 }
 0x15b   : > { %1821 = vmatmul.msk.bf16.vlgmr.msrb.gmra.mxu2 %vm567_vm5, %v553_v34 }
 0x1c8   : > { %v580_v37 = vpop.f32.mrf.mxu0 }
 0x1c9   : > { %v581_v38 = vadd.f32 %v580_v37, %v554_v36 }
 0x1cb   : > { %640 = vrot.lane.b32.xlu2 %v581_v38, %s2181_s22  ;;  %v649_v54 = vrot.slane %v581_v38, 4 }
 0x1ce   : > { %v606_v40 = vpop.f32.mrf.mxu2 }
 0x1cf   : > { %v607_v41 = vadd.f32 %v606_v40, %v584_v39 }
 0x1d0   : > { %v582_v42 = vpop.f32.mrf.mxu0 }
 0x1d1   : > { %768 = vrot.lane.b32.xlu1 %v607_v41, %s2182_s28  ;;  %762 = vrot.lane.b32.xlu0 %v607_v41, %s2183_s11  ;;  %v773_v3 = vrot.slane %v607_v41, 4 }
 0x1d3   : > { %643 = vrot.lane.b32.xlu2 %v581_v38, %s2182_s28 }
 0x1d6   : > { %v608_v43 = vpop.f32.mrf.mxu2 }
 0x1d9   : > { %765 = vrot.lane.b32.xlu0 %v607_v41, %s2181_s22  ;;  %637 = vrot.lane.b32.xlu1 %v581_v38, %s2183_s11 }
 0x225   : > { %v641_v46 = vpop.permute.xlu2 %640 }
 0x226   : > { %v646_v49 = vrot.slane %v641_v46, 4  ;;  %v650_v62 = vsel %vm647_vm6, %v641_v46, %v649_v54 }
 0x227   : > { %v658_v4 = vperm.slane %v650_v62, %v2408_v56 }
 0x228   : > { %v648_v57 = vsel %vm647_vm6, %v646_v49, %v581_v38 }
 0x229   : > { %v654_v0 = vperm.slane %v648_v57, %v2408_v56  ;;  %v685_v23 = vrot.slane %v658_v4, 4 }
 0x22b   : > { %v673_v15 = vrot.slane %v654_v0, 4 }
 0x22d   : > { %v644_v59 = vpop.permute.xlu2 %643 }
 0x22e   : > { %v659_v2 = vrot.slane %v644_v59, 4 }
 0x243   : > { %v769_v50 = vpop.permute.xlu1 %768  ;;  %v763_v51 = vpop.permute.xlu0 %762 }
 0x244   : > { %v783_v52 = vrot.slane %v769_v50, 4  ;;  %v785_v53 = vrot.slane %v763_v51, 4 }
 0x246   : > { %v786_v55 = vsel %vm647_vm6, %v769_v50, %v785_v53  ;;  %v784_v58 = vsel %vm647_vm6, %v783_v52, %v763_v51 }
 0x247   : > { %v794_v63 = vperm.slane %v786_v55, %v2408_v56  ;;  %v790_v1 = vperm.slane %v784_v58, %v2408_v56 }
 0x249   : > { %v807_v12 = vrot.slane %v794_v63, 4  ;;  %v795_v16 = vrot.slane %v790_v1, 4 }
 0x24b   : > { %v766_v6 = vpop.permute.xlu0 %765  ;;  %v638_v7 = vpop.permute.xlu1 %637 }
 0x24c   : > { %v771_v8 = vrot.slane %v766_v6, 4  ;;  %v774_v9 = vsel %vm647_vm6, %v766_v6, %v773_v3  ;;  %v660_v10 = vsel %vm647_vm6, %v659_v2, %v638_v7  ;;  %v661_v11 = vrot.slane %v638_v7, 4 }
 0x24d   : > { %v782_v13 = vperm.slane %v774_v9, %v2408_v56  ;;  %v666_v14 = vperm.slane %v660_v10, %v2408_v56 }
 0x24e   : > { %v772_v17 = vsel %vm647_vm6, %v771_v8, %v607_v41  ;;  %v662_v18 = vsel %vm647_vm6, %v644_v59, %v661_v11 }
 0x24f   : > { %v778_v19 = vperm.slane %v772_v17, %v2408_v56  ;;  %v808_v20 = vsel %vm647_vm6, %v807_v12, %v782_v13  ;;  %v809_v21 = vrot.slane %v782_v13, 4  ;;  %v670_v22 = vperm.slane %v662_v18, %v2408_v56 }
 0x250   : > { %v814_v24 = vperm.slane %v808_v20, %v2417_v5  ;;  %v671_v25 = vrot.slane %v666_v14, 4  ;;  %v674_v26 = vsel %vm647_vm6, %v666_v14, %v673_v15 }
 0x251   : > { %v796_v27 = vsel %vm647_vm6, %v795_v16, %v778_v19  ;;  %v797_v28 = vrot.slane %v778_v19, 4  ;;  %v810_v29 = vsel %vm647_vm6, %v794_v63, %v809_v21  ;;  %v682_v30 = vperm.slane %v674_v26, %v2417_v5 }
 0x252   : > { %v802_v31 = vperm.slane %v796_v27, %v2417_v5  ;;  %v818_v32 = vperm.slane %v810_v29, %v2417_v5  ;;  %v823_v34 = vrot.slane %v814_v24, 4  ;;  %v672_v36 = vsel %vm647_vm6, %v671_v25, %v654_v0 }
 0x253   : > { %v798_v37 = vsel %vm647_vm6, %v790_v1, %v797_v28  ;;  %v678_v38 = vperm.slane %v672_v36, %v2417_v5  ;;  %v683_v39 = vrot.slane %v670_v22, 4  ;;  %v686_v40 = vsel %vm647_vm6, %v670_v22, %v685_v23 }
 0x254   : > { %v806_v41 = vperm.slane %v798_v37, %v2417_v5  ;;  %v819_v42 = vrot.slane %v802_v31, 4  ;;  %v824_v43 = vsel %vm647_vm6, 0.0, %v823_v34  ;;  %v825_v44 = vrot.slane %v818_v32, 4 }
 0x255   : > { %v684_v45 = vsel %vm647_vm6, %v683_v39, %v658_v4  ;;  %v694_v46 = vperm.slane %v686_v40, %v2417_v5  ;;  %v695_v47 = vrot.slane %v678_v38, 4  ;;  %v697_v48 = vrot.slane %v682_v30, 4 }
 0x256   : > { %v821_v49 = vrot.slane %v806_v41, 4  ;;  %v826_v50 = vsel %vm647_vm6, 0.0, %v825_v44  ;;  %v838_v51 = vsel %vm647_vm6, %v825_v44, %v814_v24  ;;  %v690_v52 = vperm.slane %v684_v45, %v2417_v5 }
 0x257   : > { %v842_v53 = vperm.slane %v838_v51, %v2408_v56  ;;  %v843_v54 = vrot.slane %v826_v50, 4  ;;  %v696_v55 = vsel %vm647_vm6, 0.0, %v695_v47  ;;  %v698_v57 = vsel %vm647_vm6, 0.0, %v697_v48 }
 0x258   : > { %v822_v58 = vsel %vm647_vm6, 0.0, %v821_v49  ;;  %v699_v59 = vrot.slane %v690_v52, 4  ;;  %v701_v60 = vrot.slane %v694_v46, 4  ;;  %v703_v61 = vsel %vm647_vm6, %v697_v48, %v678_v38 }
 0x259   : > { %v844_v62 = vsel %vm647_vm6, %v843_v54, %v824_v43  ;;  %v707_v63 = vperm.slane %v703_v61, %v2408_v56  ;;  %v708_v0 = vrot.slane %v698_v57, 4  ;;  %v820_v1 = vsel %vm647_vm6, 0.0, %v819_v42 }
 0x25a   : > { %v700_v2 = vsel %vm647_vm6, 0.0, %v699_v59  ;;  %v702_v3 = vsel %vm647_vm6, 0.0, %v701_v60  ;;  %v714_v4 = vsel %vm647_vm6, %v701_v60, %v690_v52  ;;  %v827_v6 = vsel %vm647_vm6, %v821_v49, %v802_v31 }
 0x25b   : > { %v719_v7 = vrot.slane %v702_v3, 4  ;;  %v831_v8 = vperm.slane %v827_v6, %v2408_v56  ;;  %v832_v9 = vrot.slane %v822_v58, 4  ;;  %v848_v10 = vperm.slane %v844_v62, %v2408_v56 }
 0x25c   : > { %v863_v11 = vrot.slane %v842_v53, 4  ;;  %v709_v12 = vsel %vm647_vm6, %v708_v0, %v696_v55  ;;  %v718_v13 = vperm.slane %v714_v4, %v2408_v56  ;;  %v727_v14 = vrot.slane %v707_v63, 4 }
 0x25d   : > { %v833_v15 = vsel %vm647_vm6, %v832_v9, %v820_v1  ;;  %v851_v16 = vrot.slane %v831_v8, 4  ;;  %v861_v17 = vrot.slane %v848_v10, 4  ;;  %v713_v18 = vperm.slane %v709_v12, %v2408_v56  ;;  %v2017_v12 = vld [vmem:[%s2750_s29] ss:$0 sm:$0xff] }
 0x25e   : > { %v837_v19 = vperm.slane %v833_v15, %v2408_v56  ;;  %v864_v20 = vsel %vm647_vm6, %v848_v10, %v863_v11  ;;  %v720_v21 = vsel %vm647_vm6, %v719_v7, %v700_v2  ;;  %v739_v22 = vrot.slane %v718_v13, 4  ;;  %v632_v10 = vpop.f32.mrf.mxu2 }
 0x25f   : > { %v872_v23 = vperm.slane %v864_v20, %v2417_v5  ;;  %v862_v24 = vsel %vm647_vm6, %v861_v17, %v842_v53  ;;  %v724_v25 = vperm.slane %v720_v21, %v2408_v56  ;;  %v728_v26 = vsel %vm647_vm6, %v713_v18, %v727_v14 }
 0x260   : > { %v852_v27 = vsel %vm647_vm6, %v837_v19, %v851_v16  ;;  %v849_v28 = vrot.slane %v837_v19, 4  ;;  %v868_v29 = vperm.slane %v862_v24, %v2417_v5  ;;  %v725_v34 = vrot.slane %v713_v18, 4 }
 0x261   : > { %v860_v30 = vperm.slane %v852_v27, %v2417_v5  ;;  %v877_v31 = vrot.slane %v872_v23, 4  ;;  %v740_v32 = vsel %vm647_vm6, %v724_v25, %v739_v22  ;;  %v736_v38 = vperm.slane %v728_v26, %v2417_v5 }
 0x262   : > { %v850_v36 = vsel %vm647_vm6, %v849_v28, %v831_v8  ;;  %v873_v37 = vrot.slane %v868_v29, 4  ;;  %v748_v39 = vperm.slane %v740_v32, %v2417_v5  ;;  %v726_v43 = vsel %vm647_vm6, %v725_v34, %v707_v63 }
 0x263   : > { %v878_v40 = vsel %vm647_vm6, %v877_v31, %v860_v30  ;;  %v879_v41 = vrot.slane %v860_v30, 4  ;;  %v856_v42 = vperm.slane %v850_v36, %v2417_v5  ;;  %v737_v46 = vrot.slane %v724_v25, 4 }
 0x264   : > { %v883_v44 = vpack.c.bf16 %v878_v40, %v878_v40  ;;  %v753_v45 = vrot.slane %v748_v39, 4  ;;  %v732_v50 = vperm.slane %v726_v43, %v2417_v5  ;;  %v755_v55 = vrot.slane %v736_v38, 4 }
 0x265   : > { %v874_v47 = vsel %vm647_vm6, %v873_v37, %v856_v42  ;;  %v880_v48 = vsel %vm647_vm6, %v872_v23, %v879_v41  ;;  %v875_v49 = vrot.slane %v856_v42, 4  ;;  %v738_v57 = vsel %vm647_vm6, %v737_v46, %v718_v13 }
 0x266   : > { %v1052_v51 = vsel %vm1009_vm7, %v883_v44, 0  ;;  %v881_v52 = vpack.c.bf16 %v874_v47, %v874_v47  ;;  %v884_v53 = vpack.c.bf16 %v880_v48, %v880_v48  ;;  %v744_v61 = vperm.slane %v738_v57, %v2417_v5  ;;  %v634_v11 = vpop.f32.mrf.mxu2 }
 0x267   : > { %1061 = vmatpush.bf16.xpose.msra.mxu1 %v1052_v51  ;;  %v876_v54 = vsel %vm647_vm6, %v868_v29, %v875_v49  ;;  %v754_v62 = vsel %vm647_vm6, %v753_v45, %v736_v38  ;;  %v751_v63 = vrot.slane %v732_v50, 4  ;;  %v756_v2 = vsel %vm647_vm6, %v748_v39, %v755_v55 }
 0x268   : > { %v1014_v58 = vsel %vm1009_vm7, %v881_v52, 0  ;;  %v1071_v59 = vsel %vm1009_vm7, %v884_v53, 0  ;;  %v882_v60 = vpack.c.bf16 %v876_v54, %v876_v54  ;;  %v749_v1 = vrot.slane %v744_v61, 4 }
 0x269   : > { %1023 = vmatpush.bf16.xpose.msra.mxu3 %v1014_v58  ;;  %1080 = vmatpush.bf16.xpose.msra.mxu2 %v1071_v59  ;;  %v759_v3 = vpack.c.bf16 %v754_v62, %v754_v62  ;;  %v752_v6 = vsel %vm647_vm6, %v744_v61, %v751_v63  ;;  %v760_v8 = vpack.c.bf16 %v756_v2, %v756_v2  ;;  %v610_v34 = vperm.slane %v2394_v35, 2 }
 0x26a   : > { %v1033_v0 = vsel %vm1009_vm7, %v882_v60, 0  ;;  %v750_v4 = vsel %vm647_vm6, %v749_v1, %v732_v50  ;;  %v758_v9 = vpack.c.bf16 %v752_v6, %v752_v6 }
 0x26b   : > { %1042 = vmatpush.bf16.xpose.msrb.mxu0 %v1033_v0  ;;  %v757_v7 = vpack.c.bf16 %v750_v4, %v750_v4  ;;  %v633_v36 = vadd.f32 %v632_v10, %v610_v34 }
 0x26d   : > { %v897_v1 = vrot.slane %v633_v36, 4 }
 0x26e   : > { %1824 = vmatmul.msk.bf16.vlgmr.msra.gmra.mxu1 %vm1009_vm7, %v759_v3 }
 0x270   : > { %1822 = vmatmul.msk.bf16.vlgmr.msra.gmra.mxu3 %vm1009_vm7, %v757_v7  ;;  %1825 = vmatmul.msk.bf16.vlgmr.msra.gmra.mxu2 %vm1009_vm7, %v760_v8 }
 0x272   : > { %1823 = vmatmul.msk.bf16.vlgmr.msrb.gmra.mxu0 %vm1009_vm7, %v758_v9 }
 0x2eb   : > { %v1063_v13 = vpop.f32.mrf.mxu1 }
 0x2ec   : > { %v1088_v14 = vmul.f32 0.35355338, %v1063_v13 }
 0x2ee   : > { %v1096_v15 = vadd.f32 %v2017_v12, %v1088_v14 }
 0x2ef   : > { %v1044_v16 = vpop.f32.mrf.mxu0 }
 0x2f0   : > { %v1087_v17 = vmul.f32 0.35355338, %v1044_v16  ;;  %v1104_v18 = vsel %vm1009_vm7, %v1096_v15, -inf }
 0x2f1   : > { %1105 = vmax.xlane.f32.xlu2 %v1104_v18 }
 0x2f2   : > { %v1095_v23 = vadd.f32 %v2017_v12, %v1087_v17 }
 0x2f3   : > { %v1025_v19 = vpop.f32.mrf.mxu3  ;;  %v1065_v20 = vpop.f32.mrf.mxu1 }
 0x2f4   : > { %v1086_v21 = vmul.f32 0.35355338, %v1025_v19  ;;  %v1082_v22 = vpop.f32.mrf.mxu2  ;;  %v1101_v28 = vsel %vm1009_vm7, %v1095_v23, -inf }
 0x2f5   : > { %v1089_v24 = vmul.f32 0.35355338, %v1082_v22 }
 0x2f6   : > { %v1094_v25 = vadd.f32 %v2017_v12, %v1086_v21 }
 0x2f7   : > { %v1046_v26 = vpop.f32.mrf.mxu0  ;;  %v1097_v27 = vadd.f32 %v2017_v12, %v1089_v24 }
 0x2f8   : > { %v1098_v29 = vsel %vm1009_vm7, %v1094_v25, -inf }
 0x2f9   : > { %v1107_v30 = vsel %vm1009_vm7, %v1097_v27, -inf  ;;  %1102 = vmax.xlane.f32.xlu2 %v1101_v28  ;;  %1099 = vmax.xlane.f32.xlu0 %v1098_v29 }
 0x2fa   : > { %1108 = vmax.xlane.f32.xlu1 %v1107_v30 }
 0x2fb   : > { %v1027_v31 = vpop.f32.mrf.mxu3 }
 0x2fc   : > { %v1084_v32 = vpop.f32.mrf.mxu2 }
 0x30d   : > { %886 = vrot.lane.b32.xlu0 %v633_v36, %s2183_s11 }
 0x311   : > { %892 = vrot.lane.b32.xlu2 %v633_v36, %s2182_s28 }
 0x313   : > { %889 = vrot.lane.b32.xlu1 %v633_v36, %s2181_s22 }
 0x364   : > { %v1106_v37 = vpop.xlane.xlu2 %1105 }
 0x365   : > { %v1112_v38 = vsub.f32 %v1096_v15, %v1106_v37 }
 0x367   : > { %v1118_v39 = vmul.f32 1.442695, %v1112_v38 }
 0x369   : > { %2020 = vpow2.f32 %v1118_v39 }
 0x36c   : > { %v1100_v40 = vpop.xlane.xlu0 %1099  ;;  %v1103_v44 = vpop.xlane.xlu2 %1102 }
 0x36d   : > { %v1109_v41 = vpop.xlane.xlu1 %1108  ;;  %v1110_v42 = vsub.f32 %v1094_v25, %v1100_v40  ;;  %v1111_v49 = vsub.f32 %v1095_v23, %v1103_v44 }
 0x36e   : > { %v1113_v43 = vsub.f32 %v1097_v27, %v1109_v41 }
 0x36f   : > { %v2512_v45 = vpop.eup %2020  ;;  %v1114_v46 = vmul.f32 1.442695, %v1110_v42  ;;  %v1116_v50 = vmul.f32 1.442695, %v1111_v49 }
 0x370   : > { %v1120_v47 = vmul.f32 1.442695, %v1113_v43  ;;  %v1128_v48 = vsel %vm1009_vm7, %v2512_v45, 0.0 }
 0x371   : > { %1129 = vadd.xlane.f32.xlu2 %v1128_v48 }
 0x372   : > { %2022 = vpow2.f32 %v1120_v47 }
 0x373   : > { %2024 = vpow2.f32 %v1114_v46 }
 0x374   : > { %2026 = vpow2.f32 %v1116_v50  ;;  %v893_v55 = vpop.permute.xlu2 %892 }
 0x375   : > { %v907_v59 = vrot.slane %v893_v55, 4 }
 0x378   : > { %v2516_v51 = vpop.eup %2022 }
 0x379   : > { %v2518_v52 = vpop.eup %2024  ;;  %v1131_v53 = vsel %vm1009_vm7, %v2516_v51, 0.0 }
 0x37a   : > { %1132 = vadd.xlane.f32.xlu1 %v1131_v53  ;;  %v1122_v54 = vsel %vm1009_vm7, %v2518_v52, 0.0  ;;  %v2524_v57 = vpop.eup %2026 }
 0x37b   : > { %1123 = vadd.xlane.f32.xlu0 %v1122_v54  ;;  %v1125_v63 = vsel %vm1009_vm7, %v2524_v57, 0.0 }
 0x37f   : > { %v887_v58 = vpop.permute.xlu0 %886 }
 0x380   : > { %v909_v60 = vrot.slane %v887_v58, 4  ;;  %v908_v61 = vsel %vm647_vm6, %v907_v59, %v887_v58 }
 0x381   : > { %v914_v2 = vperm.slane %v908_v61, %v2408_v56 }
 0x382   : > { %v910_v62 = vsel %vm647_vm6, %v893_v55, %v909_v60 }
 0x383   : > { %v918_v0 = vperm.slane %v910_v62, %v2408_v56  ;;  %1126 = vadd.xlane.f32.xlu0 %v1125_v63  ;;  %v919_v10 = vrot.slane %v914_v2, 4 }
 0x385   : > { %v931_v3 = vrot.slane %v918_v0, 4  ;;  %v890_v4 = vpop.permute.xlu1 %889 }
 0x386   : > { %v895_v6 = vrot.slane %v890_v4, 4  ;;  %v898_v7 = vsel %vm647_vm6, %v890_v4, %v897_v1 }
 0x387   : > { %v906_v8 = vperm.slane %v898_v7, %v2408_v56 }
 0x388   : > { %v896_v9 = vsel %vm647_vm6, %v895_v6, %v633_v36 }
 0x389   : > { %v902_v11 = vperm.slane %v896_v9, %v2408_v56  ;;  %v932_v12 = vsel %vm647_vm6, %v931_v3, %v906_v8  ;;  %v933_v13 = vrot.slane %v906_v8, 4 }
 0x38a   : > { %v938_v14 = vperm.slane %v932_v12, %v2417_v5 }
 0x38b   : > { %v920_v15 = vsel %vm647_vm6, %v919_v10, %v902_v11  ;;  %v921_v16 = vrot.slane %v902_v11, 4  ;;  %v934_v17 = vsel %vm647_vm6, %v918_v0, %v933_v13 }
 0x38c   : > { %v926_v18 = vperm.slane %v920_v15, %v2417_v5  ;;  %v942_v19 = vperm.slane %v934_v17, %v2417_v5  ;;  %v947_v22 = vrot.slane %v938_v14, 4 }
 0x38d   : > { %v922_v20 = vsel %vm647_vm6, %v914_v2, %v921_v16 }
 0x38e   : > { %v930_v21 = vperm.slane %v922_v20, %v2417_v5  ;;  %v949_v23 = vrot.slane %v942_v19, 4  ;;  %v943_v24 = vrot.slane %v926_v18, 4  ;;  %v948_v31 = vsel %vm647_vm6, 0.0, %v947_v22 }
 0x390   : > { %v945_v25 = vrot.slane %v930_v21, 4  ;;  %v950_v26 = vsel %vm647_vm6, 0.0, %v949_v23  ;;  %v962_v27 = vsel %vm647_vm6, %v949_v23, %v938_v14  ;;  %v944_v39 = vsel %vm647_vm6, 0.0, %v943_v24 }
 0x391   : > { %v966_v28 = vperm.slane %v962_v27, %v2408_v56  ;;  %v967_v29 = vrot.slane %v950_v26, 4 }
 0x392   : > { %v946_v30 = vsel %vm647_vm6, 0.0, %v945_v25  ;;  %v951_v32 = vsel %vm647_vm6, %v945_v25, %v926_v18 }
 0x393   : > { %v956_v34 = vrot.slane %v946_v30, 4  ;;  %v968_v36 = vsel %vm647_vm6, %v967_v29, %v948_v31  ;;  %v955_v37 = vperm.slane %v951_v32, %v2408_v56  ;;  %v987_v38 = vrot.slane %v966_v28, 4 }
 0x394   : > { %v972_v40 = vperm.slane %v968_v36, %v2408_v56 }
 0x395   : > { %v957_v41 = vsel %vm647_vm6, %v956_v34, %v944_v39  ;;  %v975_v42 = vrot.slane %v955_v37, 4 }
 0x396   : > { %v961_v43 = vperm.slane %v957_v41, %v2408_v56  ;;  %v988_v44 = vsel %vm647_vm6, %v972_v40, %v987_v38  ;;  %v985_v46 = vrot.slane %v972_v40, 4 }
 0x397   : > { %v996_v47 = vperm.slane %v988_v44, %v2417_v5 }
 0x398   : > { %v976_v48 = vsel %vm647_vm6, %v961_v43, %v975_v42  ;;  %v973_v49 = vrot.slane %v961_v43, 4  ;;  %v986_v50 = vsel %vm647_vm6, %v985_v46, %v966_v28 }
 0x399   : > { %v984_v53 = vperm.slane %v976_v48, %v2417_v5  ;;  %v1001_v54 = vrot.slane %v996_v47, 4  ;;  %v992_v55 = vperm.slane %v986_v50, %v2417_v5 }
 0x39a   : > { %v974_v58 = vsel %vm647_vm6, %v973_v49, %v955_v37 }
 0x39b   : > { %v1002_v59 = vsel %vm647_vm6, %v1001_v54, %v984_v53  ;;  %v1003_v60 = vrot.slane %v984_v53, 4  ;;  %v980_v61 = vperm.slane %v974_v58, %v2417_v5  ;;  %v997_v62 = vrot.slane %v992_v55, 4 }
 0x39c   : > { %v1007_v63 = vpack.c.bf16 %v1002_v59, %v1002_v59 }
 0x39d   : > { %v998_v0 = vsel %vm647_vm6, %v997_v62, %v980_v61  ;;  %v999_v1 = vrot.slane %v980_v61, 4  ;;  %v1004_v2 = vsel %vm647_vm6, %v996_v47, %v1003_v60 }
 0x39e   : > { %v1189_v3 = vsel %vm1149_vm8, %v1007_v63, 0  ;;  %v1005_v4 = vpack.c.bf16 %v998_v0, %v998_v0  ;;  %v1008_v6 = vpack.c.bf16 %v1004_v2, %v1004_v2 }
 0x39f   : > { %1198 = vmatpush.bf16.msrb.mxu1 %v1189_v3  ;;  %v1000_v7 = vsel %vm647_vm6, %v992_v55, %v999_v1 }
 0x3a0   : > { %v1151_v8 = vsel %vm1149_vm8, %v1005_v4, 0  ;;  %v1208_v9 = vsel %vm1149_vm8, %v1008_v6, 0  ;;  %v1006_v10 = vpack.c.bf16 %v1000_v7, %v1000_v7 }
 0x3a1   : > { %1160 = vmatpush.bf16.msrb.mxu3 %v1151_v8  ;;  %1217 = vmatpush.bf16.msrb.mxu2 %v1208_v9 }
 0x3a2   : > { %v1170_v11 = vsel %vm1149_vm8, %v1006_v10, 0 }
 0x3a3   : > { %1179 = vmatpush.bf16.msra.mxu0 %v1170_v11 }
 0x3e4   : > { %v1130_v12 = vpop.xlane.xlu2 %1129 }
 0x3e5   : > { %2028 = vrcp.f32 %v1130_v12 }
 0x3eb   : > { %v2029_v13 = vpop.eup %2028 }
 0x3ec   : > { %v1140_v14 = vmul.f32 %v2029_v13, %v2512_v45 }
 0x3ed   : > { %v1133_v15 = vpop.xlane.xlu1 %1132 }
 0x3ee   : > { %2030 = vrcp.f32 %v1133_v15  ;;  %v1124_v16 = vpop.xlane.xlu0 %1123  ;;  %v1144_v17 = vpack.c.bf16 %v1140_v14, %v1140_v14 }
 0x3ef   : > { %2032 = vrcp.f32 %v1124_v16 }
 0x3f0   : > { %1828 = vmatmul.msk.bf16.vlgmr.msrb.gmra.mxu1 %vm1009_vm7, %v1144_v17 }
 0x3f4   : > { %v2031_v18 = vpop.eup %2030 }
 0x3f5   : > { %v2033_v19 = vpop.eup %2032  ;;  %v1141_v20 = vmul.f32 %v2031_v18, %v2516_v51 }
 0x3f6   : > { %v1138_v21 = vmul.f32 %v2033_v19, %v2518_v52  ;;  %v1127_v22 = vpop.xlane.xlu0 %1126 }
 0x3f7   : > { %v1145_v23 = vpack.c.bf16 %v1141_v20, %v1141_v20  ;;  %2034 = vrcp.f32 %v1127_v22 }
 0x3f8   : > { %v1142_v24 = vpack.c.bf16 %v1138_v21, %v1138_v21 }
 0x3f9   : > { %1829 = vmatmul.msk.bf16.vlgmr.msrb.gmra.mxu2 %vm1009_vm7, %v1145_v23 }
 0x3fa   : > { %1826 = vmatmul.msk.bf16.vlgmr.msrb.gmra.mxu3 %vm1009_vm7, %v1142_v24 }
 0x3fd   : > { %v2035_v45 = vpop.eup %2034 }
 0x3fe   : > { %v1139_v25 = vmul.f32 %v2035_v45, %v2524_v57 }
 0x400   : > { %v1143_v26 = vpack.c.bf16 %v1139_v25, %v1139_v25 }
 0x402   : > { %1827 = vmatmul.msk.bf16.vlgmr.msra.gmra.mxu0 %vm1009_vm7, %v1143_v26 }
 0x46d   : > { %v1200_v27 = vpop.f32.mrf.mxu1 }
 0x46e   : > { %v1223_v29 = vrot.slane %v1200_v27, 4 }
 0x475   : > { %v1202_v28 = vpop.f32.mrf.mxu1 }
 0x47c   : > { %v1219_v51 = vpop.f32.mrf.mxu2 }
 0x47d   : > { %v1162_v30 = vpop.f32.mrf.mxu3  ;;  %v1235_v52 = vrot.slane %v1219_v51, 4 }
 0x47e   : > { %v1224_v31 = vsel %vm647_vm6, %v1223_v29, %v1162_v30  ;;  %v1225_v32 = vrot.slane %v1162_v30, 4 }
 0x47f   : > { %v1230_v34 = vperm.slane %v1224_v31, %v2408_v56  ;;  %v1181_v36 = vpop.f32.mrf.mxu0 }
 0x480   : > { %v1226_v37 = vsel %vm647_vm6, %v1200_v27, %v1225_v32  ;;  %v1236_v38 = vsel %vm647_vm6, %v1235_v52, %v1181_v36  ;;  %v1237_v57 = vrot.slane %v1181_v36, 4  ;;  %v1903_v36 = vld [vmem:[%s2347_s24 + $0x38] sm:$0xff] }
 0x481   : > { %v1234_v39 = vperm.slane %v1226_v37, %v2408_v56  ;;  %v1249_v40 = vrot.slane %v1230_v34, 4  ;;  %v1242_v41 = vperm.slane %v1236_v38, %v2408_v56  ;;  %1373 = vmatpush.bf16.msra.mxu3 %v1903_v36  ;;  %v1902_v37 = vld [vmem:[%s2347_s24 + $0x30] sm:$0xff] }
 0x482   : > { %v1238_v42 = vsel %vm647_vm6, %v1219_v51, %v1237_v57 }
 0x483   : > { %v1261_v43 = vrot.slane %v1234_v39, 4  ;;  %v1246_v44 = vperm.slane %v1238_v42, %v2408_v56  ;;  %v1247_v46 = vrot.slane %v1242_v41, 4  ;;  %v1250_v47 = vsel %vm647_vm6, %v1242_v41, %v1249_v40 }
 0x484   : > { %v1258_v48 = vperm.slane %v1250_v47, %v2417_v5  ;;  %v1221_v49 = vpop.f32.mrf.mxu2 }
 0x485   : > { %v1248_v50 = vsel %vm647_vm6, %v1247_v46, %v1230_v34  ;;  %v1259_v53 = vrot.slane %v1246_v44, 4  ;;  %v1262_v54 = vsel %vm647_vm6, %v1246_v44, %v1261_v43  ;;  %v1164_v55 = vpop.f32.mrf.mxu3  ;;  %1374 = vmatpush.bf16.msra.mxu3 %v1902_v37  ;;  %v1351_v43 = vperm.slane %v2394_v35, 3 }
 0x486   : > { %v1254_v58 = vperm.slane %v1248_v50, %v2417_v5  ;;  %v1270_v59 = vperm.slane %v1262_v54, %v2417_v5  ;;  %v1273_v60 = vrot.slane %v1258_v48, 4  ;;  %v2189_v50 = vmov 32.0  }
 0x487   : > { %v1260_v61 = vsel %vm647_vm6, %v1259_v53, %v1234_v39  ;;  %v1183_v62 = vpop.f32.mrf.mxu0  ;;  %2036 = vrcp.f32 %v2189_v50 }
 0x488   : > { %v1266_v63 = vperm.slane %v1260_v61, %v2417_v5  ;;  %v1271_v0 = vrot.slane %v1254_v58, 4  ;;  %v1274_v1 = vsel %vm647_vm6, 0.0, %v1273_v60  ;;  %v1277_v2 = vrot.slane %v1270_v59, 4 }
 0x489   : > { %v1279_v3 = vsel %vm647_vm6, %v1273_v60, %v1254_v58  ;;  %v1284_v4 = vrot.slane %v1274_v1, 4  ;;  %v1905_v1 = vld [vmem:[%s2353_s20 + $0x8] sm:$0xff] }
 0x48a   : > { %v1272_v6 = vsel %vm647_vm6, 0.0, %v1271_v0  ;;  %v1275_v7 = vrot.slane %v1266_v63, 4  ;;  %v1278_v8 = vsel %vm647_vm6, 0.0, %v1277_v2  ;;  %v1283_v9 = vperm.slane %v1279_v3, %v2408_v56  ;;  %1444 = vmatpush.bf16.msrb.mxu0 %v1905_v1  ;;  %v1913_v3 = vld [vmem:[%s2358_s18 + $0x38] sm:$0xff]  ;;  %v2019_v1 = vld [vmem:[%s2363_s13 + $0x8] ss:$0 sm:$0xff] }
 0x48b   : > { %v1295_v10 = vrot.slane %v1278_v8, 4  ;;  %v1285_v11 = vsel %vm647_vm6, %v1284_v4, %v1272_v6  ;;  %v1290_v12 = vsel %vm647_vm6, %v1277_v2, %v1266_v63  ;;  %v1904_v2 = vld [vmem:[%s2353_s20] sm:$0xff]  ;;  %1526 = vmatpush.bf16.msra.mxu1 %v1913_v3 }
 0x48c   : > { %v1276_v13 = vsel %vm647_vm6, 0.0, %v1275_v7  ;;  %v1289_v14 = vperm.slane %v1285_v11, %v2408_v56  ;;  %v1294_v15 = vperm.slane %v1290_v12, %v2408_v56  ;;  %v1303_v16 = vrot.slane %v1283_v9, 4 }
 0x48d   : > { %v1296_v17 = vsel %vm647_vm6, %v1295_v10, %v1276_v13  ;;  %v2037_v53 = vpop.eup %2036 }
 0x48e   : > { %v1300_v18 = vperm.slane %v1296_v17, %v2408_v56  ;;  %v1304_v19 = vsel %vm647_vm6, %v1289_v14, %v1303_v16  ;;  %v1315_v20 = vrot.slane %v1294_v15, 4  ;;  %v1301_v21 = vrot.slane %v1289_v14, 4  ;;  %1445 = vmatpush.bf16.msrb.mxu0 %v1904_v2 }
 0x48f   : > { %v1312_v22 = vperm.slane %v1304_v19, %v2417_v5  ;;  %v1385_v54 = vmul.f32 32.0, %v2037_v53  ;;  %vm1389_vm11 = vweird.f32 %v2037_v53  ;;  %v1410_v14 = vperm.slane %v2394_v35, 4 }
 0x490   : > { %v1316_v23 = vsel %vm647_vm6, %v1300_v18, %v1315_v20  ;;  %v1302_v24 = vsel %vm647_vm6, %v1301_v21, %v1283_v9  ;;  %v1313_v45 = vrot.slane %v1300_v18, 4  ;;  %v1412_v16 = vperm.slane %v2394_v35, 5  ;;  %v1912_v21 = vld [vmem:[%s2358_s18 + $0x30] sm:$0xff]  ;;  %v1907_v35 = vld [vmem:[%s2358_s18 + $0x8] sm:$0xff] }
 0x491   : > { %v1324_v25 = vperm.slane %v1316_v23, %v2417_v5  ;;  %v1331_v26 = vrot.slane %v1312_v22, 4  ;;  %v1308_v27 = vperm.slane %v1302_v24, %v2417_v5  ;;  %v1386_v55 = vsub.f32 1.0, %v1385_v54  ;;  %1527 = vmatpush.bf16.msra.mxu1 %v1912_v21  ;;  %v1910_v23 = vld [vmem:[%s2358_s18 + $0x20] sm:$0xff]  ;;  %v1909_v24 = vld [vmem:[%s2358_s18 + $0x18] sm:$0xff] }
 0x492   : > { %v1314_v28 = vsel %vm647_vm6, %v1313_v45, %v1294_v15  ;;  %v1908_v45 = vld [vmem:[%s2358_s18 + $0x10] sm:$0xff] }
 0x493   : > { %v1332_v56 = vsel %vm647_vm6, %v1324_v25, %v1331_v26  ;;  %v1329_v29 = vrot.slane %v1324_v25, 4  ;;  %v1320_v51 = vperm.slane %v1314_v28, %v2417_v5  ;;  %v1327_v30 = vrot.slane %v1308_v27, 4  ;;  %v1906_v25 = vld [vmem:[%s2358_s18] sm:$0xff] }
 0x494   : > { %1342 = vrot.lane.b32.xlu2 %v1332_v56, %s2186_s23  ;;  %v1387_v58 = vmul.f32 %v2037_v53, %v1386_v55  ;;  %v2018_v26 = vld [vmem:[%s490_s21] ss:$0 sm:$0xff] }
 0x495   : > { %v1330_v52 = vsel %vm647_vm6, %v1329_v29, %v1312_v22  ;;  %v1325_v31 = vrot.slane %v1320_v51, 4  ;;  %v1328_v32 = vsel %vm647_vm6, %v1320_v51, %v1327_v30  ;;  %v1911_v22 = vld [vmem:[%s2358_s18 + $0x28] sm:$0xff] }
 0x496   : > { %1338 = vrot.lane.b32.xlu0 %v1330_v52, %s2187_s30  ;;  %1334 = vrot.lane.b32.xlu1 %v1328_v32, %s2188_s8  ;;  %v1388_v59 = vadd.f32 %v2037_v53, %v1387_v58 }
 0x497   : > { %v1326_v34 = vsel %vm647_vm6, %v1325_v31, %v1308_v27  ;;  %1528 = vmatpush.bf16.msra.mxu1 %v1911_v22 }
 0x498   : > { %v2627_v60 = vsel %vm1389_vm11, %v2037_v53, %v1388_v59 }
 0x49b   : > { %1529 = vmatpush.bf16.msra.mxu1 %v1910_v23 }
 0x49f   : > { %1530 = vmatpush.bf16.msra.mxu1 %v1909_v24 }
 0x4a3   : > { %1531 = vmatpush.bf16.msra.mxu1 %v1908_v45 }
 0x4a7   : > { %1532 = vmatpush.bf16.msra.mxu1 %v1907_v35 }
 0x4ab   : > { %1533 = vmatpush.bf16.msra.mxu1 %v1906_v25 }
 0x4ee   : > { %v1343_v39 = vpop.permute.xlu2 %1342 }
 0x508   : > { %v1339_v5 = vpop.permute.xlu0 %1338  ;;  %v1335_v38 = vpop.permute.xlu1 %1334 }
 0x509   : > { %v1345_v57 = vsel %vm1009_vm7, %v1326_v34, %v1335_v38  ;;  %v2044_v38 = vld [vmem:[%s2363_s13] sm:$0xff] }
 0x50a   : > { %v1347_v40 = vsel %vm1346_vm9, %v1345_v57, %v1339_v5  ;;  %v1477_v57 = vperm.slane %v2044_v38, 6 }
 0x50b   : > { %v1349_v41 = vsel %vm1348_vm10, %v1347_v40, %v1343_v39 }
 0x50c   : > { %v1350_v42 = vpack.c.bf16 %v1349_v41, %v1349_v41 }
 0x50e   : > { %1838 = vmatmul.msk.bf16.vlgmr.msra.gmra.mxu3 %vm567_vm5, %v1350_v42 }
 0x591   : > { %v1376_v44 = vpop.f32.mrf.mxu3 }
 0x592   : > { %v1377_v46 = vadd.f32 %v1376_v44, %v1351_v43 }
 0x594   : > { %v1380_v47 = vadd.f32 %v1377_v46, %v2387_v33 }
 0x596   : > { %v1381_v48 = vsel %vm567_vm5, %v1380_v47, 0.0 }
 0x597   : > { %1382 = vadd.xlane.f32.xlu0 %v1381_v48 }
 0x599   : > { %v1378_v49 = vpop.f32.mrf.mxu3 }
 0x60a   : > { %v1383_v61 = vpop.xlane.xlu0 %1382 }
 0x60b   : > { %v1391_v33 = vmul.f32 %v2627_v60, %v1383_v61 }
 0x60d   : > { %v1392_v62 = vsub.f32 %v1380_v47, %v1391_v33 }
 0x60f   : > { %v1393_v63 = vmul.f32 %v1392_v62, %v1392_v62 }
 0x611   : > { %v1394_v0 = vsel %vm567_vm5, %v1393_v63, 0.0  ;;  %v1562_v63 = vperm.slane %v2044_v38, 7 }
 0x612   : > { %1395 = vadd.xlane.f32.xlu1 %v1394_v0 }
 0x685   : > { %v1396_v4 = vpop.xlane.xlu1 %1395 }
 0x686   : > { %v1397_v6 = vmul.f32 %v1396_v4, %v2627_v60 }
 0x688   : > { %v1398_v7 = vadd.f32 1e-07, %v1397_v6 }
 0x68a   : > { %2038 = vrsqrt.f32 %v1398_v7  ;;  %vm1405_vm13 = vweird.f32 %v1398_v7 }
 0x690   : > { %v2039_v8 = vpop.eup %2038 }
 0x691   : > { %v1400_v9 = vmul.f32 %v2039_v8, %v1398_v7  ;;  %vm1406_vm12 = vweird.f32 %v2039_v8 }
 0x692   : > { %vm1407_vm14 = vmor %vm1405_vm13, %vm1406_vm12 }
 0x693   : > { %v1401_v10 = vmul.f32 %v2039_v8, %v1400_v9 }
 0x695   : > { %v1402_v11 = vmul.f32 0.5, %v1401_v10 }
 0x697   : > { %v1403_v12 = vsub.f32 1.5, %v1402_v11 }
 0x699   : > { %v1404_v13 = vmul.f32 %v2039_v8, %v1403_v12 }
 0x69b   : > { %v1408_v15 = vsel %vm1407_vm14, %v2039_v8, %v1404_v13 }
 0x69c   : > { %v1409_v17 = vmul.f32 %v1408_v15, %v1392_v62 }
 0x69e   : > { %v1411_v18 = vmul.f32 %v1410_v14, %v1409_v17 }
 0x6a0   : > { %v1413_v19 = vadd.f32 %v1412_v16, %v1411_v18 }
 0x6a2   : > { %v1414_v20 = vpack.c.bf16 %v1413_v19, %v1413_v19 }
 0x6a4   : > { %1847 = vmatmul.msk.bf16.vlgmr.msrb.gmra.mxu0 %vm567_vm5, %v1414_v20 }
 0x721   : > { %v1447_v27 = vpop.f32.mrf.mxu0 }
 0x722   : > { %v1448_v28 = vadd.f32 %v2018_v26, %v1447_v27 }
 0x724   : > { %v1451_v56 = vmul.f32 %v1448_v28, %v1448_v28 }
 0x726   : > { %v1452_v29 = vmul.f32 %v1451_v56, %v1448_v28 }
 0x728   : > { %v1453_v51 = vmul.f32 0.044715, %v1452_v29 }
 0x729   : > { %v1449_v30 = vpop.f32.mrf.mxu0 }
 0x72a   : > { %v1454_v52 = vadd.f32 %v1453_v51, %v1448_v28 }
 0x72c   : > { %v1455_v31 = vmul.f32 0.7978846, %v1454_v52 }
 0x72e   : > { %2040 = vtanh.f32 %v1455_v31 }
 0x734   : > { %v2041_v32 = vpop.eup %2040 }
 0x735   : > { %v1457_v34 = vadd.f32 1.0, %v2041_v32 }
 0x737   : > { %v1458_v36 = vmul.f32 0.5, %v1457_v34 }
 0x739   : > { %v1459_v37 = vmul.f32 %v1458_v36, %v1448_v28 }
 0x73b   : > { %v1460_v5 = vpack.c.bf16 %v1459_v37, %v1459_v37 }
 0x73d   : > { %1534 = vmatmul.bf16.vlgmr.msra.gmra.mxu1 %v1460_v5 }
 0x7ba   : > { %v1535_v39 = vpop.f32.mrf.mxu1 }
 0x7bb   : > { %v1536_v40 = vadd.f32 %v1535_v39, %v1477_v57 }
 0x7bd   : > { %v1539_v41 = vadd.f32 %v1536_v40, %v1413_v19 }
 0x7bf   : > { %v1540_v42 = vsel %vm567_vm5, %v1539_v41, 0.0 }
 0x7c0   : > { %1541 = vadd.xlane.f32.xlu2 %v1540_v42 }
 0x7c2   : > { %v1537_v43 = vpop.f32.mrf.mxu1 }
 0x833   : > { %v1542_v44 = vpop.xlane.xlu2 %1541 }
 0x834   : > { %v1543_v46 = vmul.f32 %v1542_v44, %v2627_v60 }
 0x836   : > { %v1544_v47 = vsub.f32 %v1539_v41, %v1543_v46 }
 0x838   : > { %v1545_v48 = vmul.f32 %v1544_v47, %v1544_v47 }
 0x83a   : > { %v1546_v49 = vsel %vm567_vm5, %v1545_v48, 0.0 }
 0x83b   : > { %1547 = vadd.xlane.f32.xlu0 %v1546_v49 }
 0x8ae   : > { %v1548_v50 = vpop.xlane.xlu0 %1547 }
 0x8af   : > { %v1549_v53 = vmul.f32 %v1548_v50, %v2627_v60 }
 0x8b1   : > { %v1550_v54 = vadd.f32 1e-07, %v1549_v53 }
 0x8b3   : > { %2042 = vrsqrt.f32 %v1550_v54  ;;  %vm1557_vm0 = vweird.f32 %v1550_v54 }
 0x8b9   : > { %v2043_v55 = vpop.eup %2042 }
 0x8ba   : > { %v1552_v58 = vmul.f32 %v2043_v55, %v1550_v54  ;;  %vm1558_vm15 = vweird.f32 %v2043_v55 }
 0x8bb   : > { %vm1559_vm1 = vmor %vm1557_vm0, %vm1558_vm15 }
 0x8bc   : > { %v1553_v59 = vmul.f32 %v2043_v55, %v1552_v58 }
 0x8be   : > { %v1554_v61 = vmul.f32 0.5, %v1553_v59 }
 0x8c0   : > { %v1555_v33 = vsub.f32 1.5, %v1554_v61 }
 0x8c2   : > { %v1556_v62 = vmul.f32 %v2043_v55, %v1555_v33 }
 0x8c4   : > { %v1560_v0 = vsel %vm1559_vm1, %v2043_v55, %v1556_v62 }
 0x8c5   : > { %v1561_v2 = vmul.f32 %v1560_v0, %v1544_v47 }
 0x8c7   : > { %v1563_v3 = vmul.f32 %v1562_v63, %v1561_v2  ;;  %1570 = sbr.rel (%p1880_p5) target bundleno = 2407 (0x967), region = 72 }
 0x8c9   : > { %v1565_v4 = vadd.f32 %v2019_v1, %v1563_v3 }
 0x8cb   : > { %1566 = vst.msk [vmem:[#allocation2] sm:$0xff] %vm567_vm5, %v1565_v4 }
 0x8cc   : > { %v1915_v60 = vld [vmem:[#allocation3 + $0x8] sm:$0xff]  ;;  %v1571_v6 = vsel %vm567_vm5, %v1565_v4, 0.0  ;;  %v2190_v8 = vmov 8.0   ;;  %v1914_v9 = vld [vmem:[#allocation3] sm:$0xff]  ;;  %v1591_v23 = vld [vmem:[%s2718_s9] sm:$0x1] }
 0x8cd   : > { %v1572_v7 = vrot.slane %v1571_v6, 4  ;;  %2045 = vrcp.f32 %v2190_v8  ;;  %1613 = vmatpush.bf16.msra.mxu0 %v1915_v60 }
 0x8cf   : > { %v1573_v10 = vadd.f32 %v1572_v7, %v1571_v6 }
 0x8d1   : > { %v1574_v11 = vrot.slane %v1573_v10, 2  ;;  %1614 = vmatpush.bf16.msra.mxu0 %v1914_v9 }
 0x8d3   : > { %v2046_v12 = vpop.eup %2045  ;;  %v1575_v13 = vadd.f32 %v1574_v11, %v1573_v10 }
 0x8d4   : > { %v1579_v14 = vmul.f32 8.0, %v2046_v12  ;;  %vm1583_vm2 = vweird.f32 %v2046_v12 }
 0x8d5   : > { %v1576_v15 = vrot.slane %v1575_v13, 1 }
 0x8d6   : > { %v1580_v16 = vsub.f32 1.0, %v1579_v14 }
 0x8d7   : > { %v1577_v18 = vadd.f32 %v1576_v15, %v1575_v13 }
 0x8d8   : > { %v1581_v17 = vmul.f32 %v2046_v12, %v1580_v16 }
 0x8da   : > { %v1582_v19 = vadd.f32 %v2046_v12, %v1581_v17 }
 0x8dc   : > { %v1584_v20 = vsel %vm1583_vm2, %v2046_v12, %v1582_v19 }
 0x8dd   : > { %v1585_v21 = vmul.f32 %v1584_v20, %v1577_v18 }
 0x8df   : > { %v1586_v22 = vpack.c.bf16 %v1585_v21, %v1585_v21 }
 0x8e1   : > { %1889 = vmatmul.msk.bf16.vlgmr.msra.gmra.mxu0 %vm567_vm5, %v1586_v22 }
 0x95e   : > { %v1616_v24 = vpop.f32.mrf.mxu0 }
 0x95f   : > { %v1617_v45 = vadd.f32 %v1616_v24, %v1591_v23 }
 0x961   : > { %1620 = vst [vmem:[%s2371_s0] sm:$0x1] %v1617_v45 }
 0x966   : > { %v1618_v35 = vpop.f32.mrf.mxu0 }
 0x967 PF: > { %s2751_s21 = sld [smem:[#allocation21_spill]]  ;;  %s1632_s19 = sshll.u32 %s2371_s0, 4  ;;  %s1633_s19 = int_to_ptr.vmem [resolvable:$true] %s1632_s19 }
 0x968   : > { %s2753_s22 = sand.u32 1, %s2151_s14  }
 0x969   : > { %s1622_s28 = scalar_lea.sflag [#allocation5], %s2753_s22 }
 0x96d   : > { %s1630_s15 = scalar_lea.hbm %s2751_s21, %s2163_s17  ;;  %s2097_s23 = scalar_lea.hbm %s2751_s21, 2 }
 0x96e   : > { %s1634_s26 = sshll.u32 %s1630_s15, 4  ;;  %s1635_s26 = int_to_ptr.hbm [resolvable:$true] %s1634_s26 }
 0x96f   : > { %s2091_s11 = sshra.s32 %s1635_s26, 4  ;;  %s2092_s11 = int_to_ptr.hbm [resolvable:$true] %s2091_s11 }
 0x970   : > { %s2093_s12 = scalar_lea.hbm %s2092_s11, 1  ;;  %p2098_p10 = scmp.lt.s32.totalorder %s2092_s11, %s2751_s21 }
 0x971   : > { %p2094_p6 = scmp.ne.s32.totalorder %s2092_s11, %s2093_s12  ;;  %p2099_p11 = scmp.lt.s32.totalorder %s2097_s23, %s2093_s12 }
 0x973   : > { %p2095_p7 = pnand %p2094_p6, %p2296_p3  ;;  %p2100_p12 = por %p2099_p11, %p2098_p10 }
 0x975   : > { %p2096_p8 = pneg %p2095_p7 }
 0x977   : > { %p2101_p13 = pnand %p2100_p12, %p2096_p8 }
 0x979   : > { %2104 = shalt.err (!%p2101_p13)
}
 0x97a   : > { %1920 = dma.vmem_to_hbm [thread:$0]  (%p2296_p3), %s1633_s19, 16, %s1635_s26, %s1622_s28  }
 0x97b PF: > { %s2754_s0 = sld [smem:[#allocation13_spill]] }
 0x97c   : > { %s2755_s17 = sld [smem:[#allocation9_spill]] }
 0x981   : > { %p1932_p0 = scmp.ge.s32.totalorder %s2754_s0, 2 }
 0x982   : > { %s1646_s24 = sand.u32 1, %s2755_s17  }
 0x983   : > { %p1927_p1 = pnand %p1932_p0, %p2306_p9  ;;  %s1647_s16 = scalar_lea.sflag [#allocation5], %s1646_s24 }
 0x985   : > { %p1928_p2 = pneg %p1927_p1 }
 0x987   : > { %2142 = dma.done.wait (%p1928_p2), %s1647_s16, 16  }
 0x988   : > { %2144 = vsyncadd (%p1928_p2), %s1647_s16, 4294967280  ;;  %s24_s20 = sadd.s32 1, %s2754_s0   ;;  %s2757_s25 = sld [smem:[#allocation10_spill]] }
 0x989   : > { %p21_p4 = scmp.ge.s32.totalorder %s24_s20, 6   ;;  %s2758_s15 = sld [smem:[#allocation18_spill]] }
 0x98a   : > { %s2759_s16 = sld [smem:[#allocation11_spill]]  ;;  %s2763_s13 = smov %s2151_s14 }
 0x98b   : > { %s2760_s17 = sld [smem:[#allocation12_spill]]  ;;  %23 = sbr.rel (!%p21_p4) target bundleno = 10 (0xa), region = 126 }
 0x98c   : > { %s2761_s18 = sld [smem:[#allocation14_spill]] }
 0x98d   : > { %s2762_s19 = sld [smem:[#allocation16_spill]] }
 0x98e   : > { %s2764_s14 = smov %s2757_s25 }
 0x990   :  { %1652 = vsyncpa [#allocation4], 1 }
 0x991   :  { %1654 = vsyncpa [#allocation4 + $0x1], 1 }
 0x992   :  { %1655 = vsyncpa [#allocation5], 1 }
 0x993   :  { %1657 = vsyncpa [#allocation5 + $0x1], 1 }

</bundles_post_ra>
